<compile_context>
chip_gen: v7x
topology: tpu7x:2x2x1
jax: 0.10.0
libtpu: 0.0.40
codegen_flags: <defaults>
</compile_context>

<pallas_src>
import functools

import jax
import jax.numpy as jnp
from jax import lax
from jax.experimental import pallas as pl
from jax.experimental.pallas import tpu as pltpu

LN_EPS = 1e-5


def _gelu_erf(x):
    # exact (erf) GELU, matching torch.nn.GELU() default
    return 0.5 * x * (1.0 + lax.erf(x * (1.0 / jnp.sqrt(2.0).astype(x.dtype))))


def _gelu_tanh(x):
    # tanh approximation (runs on the EUP slot; optional, relaxes parity)
    c = 0.7978845608028654  # sqrt(2/pi)
    return 0.5 * x * (1.0 + jnp.tanh(c * (x + 0.044715 * x * x * x)))


def _layernorm(h, gamma, beta):
    mu = jnp.mean(h, axis=-1, keepdims=True)
    var = jnp.mean((h - mu) ** 2, axis=-1, keepdims=True)
    return (h - mu) * lax.rsqrt(var + LN_EPS) * gamma + beta


# ------------------------------------------------------------ fused kernel ---

def fused_forward_kernel(x_ref, w_in_ref, b_in_ref,
                         ln_g_ref, ln_b_ref, w1_ref, b1_ref, w2_ref, b2_ref,
                         ln_go_ref, ln_bo_ref, w_out_ref, b_out_ref,
                         o_ref, *, out_is_vec, use_bf16, approx_gelu):
    gelu = _gelu_tanh if approx_gelu else _gelu_erf

    def mxu_dot(a, b):
        # bf16 operands on the MXU, f32 accumulate.
        if use_bf16:
            a = a.astype(jnp.bfloat16)
            b = b.astype(jnp.bfloat16)
        return jnp.dot(a, b, preferred_element_type=jnp.float32)

    # input linear + (dropout p=0) + GELU
    h = gelu(mxu_dot(x_ref[...], w_in_ref[...]) + b_in_ref[...])

    # residual FFN blocks (static Python loop over stacked layer params)
    num_layers = ln_g_ref.shape[0]
    for l in range(num_layers):
        hn = _layernorm(h, ln_g_ref[l], ln_b_ref[l])
        z = gelu(mxu_dot(hn, w1_ref[l]) + b1_ref[l])
        h = h + mxu_dot(z, w2_ref[l]) + b2_ref[l]

    # final LayerNorm + output linear
    hn = _layernorm(h, ln_go_ref[...], ln_bo_ref[...])
    if out_is_vec:
        # output_dim == 1: VPU multiply + lane reduction (w_out is (1, H)),
        # then relayout the per-row column into a lane-dense (1, 1, tm) row
        # so the store is an unmasked vst instead of tm/8 masked vst.msk.
        tm = hn.shape[0]
        col = jnp.sum(hn * w_out_ref[...], axis=-1)            # (tm,)
        o_ref[...] = (col.reshape(1, 1, tm)
                      + b_out_ref[...]).astype(o_ref.dtype)    # (1,1,tm)
    else:
        o_ref[...] = (mxu_dot(hn, w_out_ref[...])
                      + b_out_ref[...]).astype(o_ref.dtype)


# ---------------------------------------------------------------- wrapper ---

def _round_up(x, m):
    return ((x + m - 1) // m) * m


def _choose_tm(n):
    """Node-tile heuristic.

    Prefer tiles that (a) divide the 8-padded node count -> no jnp.pad HBM
    rewrite of x, (b) give >= 2 grid steps so both v7x TensorCores get work
    under "parallel" semantics, (c) stay >= 128 rows to amortize the ~0.35us
    per-step pipeline overhead.  For tiny inputs fall back to a single step.
    """
    n8 = _round_up(n, 8)
    for cand in (1024, 512, 256, 128):
        if n8 % cand == 0 and n8 // cand >= 2:
            return cand
    if n8 >= 256:
        return min(_round_up((n8 + 1) // 2, 8), 1024)
    return n8


def _full_spec(shape):
    nd = len(shape)
    return pl.BlockSpec(shape, lambda i, _nd=nd: (0,) * _nd)


def model_forward(params, x, *, tm=None, use_bf16=True, approx_gelu=False):
    n, d_in = x.shape
    out_dim = params["w_out"].shape[1]
    num_layers = len(params["layers"])
    assert num_layers >= 1

    # Stack per-layer params -> fixed, small arg list; one-time VMEM residents.
    ln_g = jnp.stack([l["ln_g"] for l in params["layers"]])   # (L, 1, H)
    ln_b = jnp.stack([l["ln_b"] for l in params["layers"]])   # (L, 1, H)
    w1 = jnp.stack([l["w1"] for l in params["layers"]])       # (L, H, F)
    b1 = jnp.stack([l["b1"] for l in params["layers"]])       # (L, 1, F)
    w2 = jnp.stack([l["w2"] for l in params["layers"]])       # (L, F, H)
    b2 = jnp.stack([l["b2"] for l in params["layers"]])       # (L, 1, H)

    out_is_vec = (out_dim == 1)
    w_out = params["w_out"].T if out_is_vec else params["w_out"]

    if tm is None:
        tm = _choose_tm(n)
    n_pad = _round_up(n, tm)
    # Pad only if tm does not divide the node count (rare with the heuristic).
    # Pad rows are zeros; they pass through LayerNorm with var=0 ->
    # rsqrt(0+eps) keeps them finite, and they are sliced off afterwards.
    x_p = jnp.pad(x, ((0, n_pad - n), (0, 0))) if n_pad != n else x
    grid = (n_pad // tm,)

    ins = (x_p, params["w_in"], params["b_in"],
           ln_g, ln_b, w1, b1, w2, b2,
           params["ln_g"], params["ln_b"], w_out, params["b_out"])
    in_specs = [pl.BlockSpec((tm, d_in), lambda i: (i, 0))]
    in_specs += [_full_spec(a.shape) for a in ins[1:]]

    if out_is_vec:
        # lane-dense output: one (1, tm) row per grid step
        out_shape = jax.ShapeDtypeStruct((grid[0], 1, tm), jnp.float32)
        out_spec = pl.BlockSpec((1, 1, tm), lambda i: (i, 0, 0))
    else:
        out_shape = jax.ShapeDtypeStruct((n_pad, out_dim), jnp.float32)
        out_spec = pl.BlockSpec((tm, out_dim), lambda i: (i, 0))

    out = pl.pallas_call(
        functools.partial(fused_forward_kernel, out_is_vec=out_is_vec,
                          use_bf16=use_bf16, approx_gelu=approx_gelu),
        out_shape=out_shape,
        grid_spec=pltpu.PrefetchScalarGridSpec(
            num_scalar_prefetch=0,
            grid=grid,
            in_specs=in_specs,
            out_specs=out_spec,
        ),
        compiler_params=pltpu.CompilerParams(
            dimension_semantics=("parallel",)),
    )(*ins)

    if out_is_vec:
        out = out.reshape(n_pad)[:n]          # (grid,1,tm) -> (n,)  (.squeeze(1))
    else:
        out = out[:n]
    return out


# -------------------------------------------------- pure-JAX reference(s) ---

def model_reference(params, x, *, use_bf16=False):
    """Reference forward. use_bf16=True mirrors the kernel's bf16-MXU path."""
    def dot(a, b):
        if use_bf16:
            a = a.astype(jnp.bfloat16)
            b = b.astype(jnp.bfloat16)
            return jnp.dot(a, b, preferred_element_type=jnp.float32)
        return jnp.dot(a, b, preferred_element_type=jnp.float32,
                       precision=lax.Precision.HIGHEST)

    h = _gelu_erf(dot(x, params["w_in"]) + params["b_in"])
    for lyr in params["layers"]:
        hn = _layernorm(h, lyr["ln_g"], lyr["ln_b"])
        z = _gelu_erf(dot(hn, lyr["w1"]) + lyr["b1"])
        h = h + dot(z, lyr["w2"]) + lyr["b2"]
    hn = _layernorm(h, params["ln_g"], params["ln_b"])
    # output projection matches the kernel's f32 path (VPU mul + reduce for
    # out_dim == 1), so keep it full precision here.
    out = jnp.dot(hn, params["w_out"], preferred_element_type=jnp.float32,
                  precision=lax.Precision.HIGHEST) + params["b_out"]
    if out.shape[1] == 1:
        out = out.reshape(-1)
    return out


# ------------------------------------------------------------------- main ---

def init_params(key, input_dim, hidden_dim, output_dim, hidden_mult,
                num_layers):
    ffn_dim = int(hidden_dim * hidden_mult)
    ks = jax.random.split(key, 4 + 4 * num_layers)
    it = iter(ks)

    def lin(k, din, dout):
        return jax.random.normal(k, (din, dout), jnp.float32) * (1.0 / jnp.sqrt(din))

    params = {
        "w_in": lin(next(it), input_dim, hidden_dim),
        "b_in": jax.random.normal(next(it), (1, hidden_dim), jnp.float32) * 0.02,
        "layers": [],
        "ln_g": jnp.ones((1, hidden_dim), jnp.float32),
        "ln_b": jnp.zeros((1, hidden_dim), jnp.float32),
        "w_out": lin(next(it), hidden_dim, output_dim),
        "b_out": jax.random.normal(next(it), (1, output_dim), jnp.float32) * 0.02,
    }
    for _ in range(num_layers):
        params["layers"].append({
            "ln_g": jnp.ones((1, hidden_dim), jnp.float32),
            "ln_b": jnp.zeros((1, hidden_dim), jnp.float32),
            "w1": lin(next(it), hidden_dim, ffn_dim),
            "b1": jax.random.normal(next(it), (1, ffn_dim), jnp.float32) * 0.02,
            "w2": lin(next(it), ffn_dim, hidden_dim),
            "b2": jax.random.normal(next(it), (1, hidden_dim), jnp.float32) * 0.02,
        })
    return params


if __name__ == "__main__":
    NUM_NODES = 256
    INPUT_DIM = 32
    HIDDEN_DIM = 64
    OUTPUT_DIM = 1
    HIDDEN_MULT = 2
    NUM_LAYERS = 2

    key = jax.random.PRNGKey(0)
    k_p, k_x = jax.random.split(key)
    params = init_params(k_p, INPUT_DIM, HIDDEN_DIM, OUTPUT_DIM, HIDDEN_MULT,
                         NUM_LAYERS)
    # graph argument is unused by the ResNet / FeedForward path -> not needed
    x = jax.random.normal(k_x, (NUM_NODES, INPUT_DIM), jnp.float32)

    ref_f32 = model_reference(params, x, use_bf16=False)
    ref_bf16 = model_reference(params, x, use_bf16=True)

    # 1) exact path (f32 MXU, erf GELU) — strict parity with the torch module
    out_exact = jax.block_until_ready(model_forward(params, x, use_bf16=False))
    assert out_exact.shape == ref_f32.shape
    err_exact = float(jnp.max(jnp.abs(out_exact - ref_f32)))
    assert err_exact < 1e-3, f"exact-path mismatch: {err_exact}"

    # 2) perf path (bf16 MXU operands, f32 accumulate) — check against a
    #    reference that applies the same bf16 rounding, plus a loose sanity
    #    bound against the full-f32 reference.
    out = jax.block_until_ready(model_forward(params, x, use_bf16=True))
    assert out.shape == ref_f32.shape
    err_matched = float(jnp.max(jnp.abs(out - ref_bf16)))
    err_vs_f32 = float(jnp.max(jnp.abs(out - ref_f32)))
    assert err_matched < 5e-3, f"bf16-path mismatch vs matched ref: {err_matched}"
    assert err_vs_f32 < 2.5e-1, f"bf16-path drift vs f32 ref: {err_vs_f32}"

    print("KERNEL_OK")
</pallas_src>

<mosaic_0001>
module attributes {stable_mosaic.version = 11 : i64} {
  func.func @fused_forward_kernel(%arg0: i32, %arg1: memref<128x32xf32, #tpu.memory_space<vmem>>, %arg2: memref<32x64xf32, #tpu.memory_space<vmem>>, %arg3: memref<1x64xf32, #tpu.memory_space<vmem>>, %arg4: memref<2x1x64xf32, #tpu.memory_space<vmem>>, %arg5: memref<2x1x64xf32, #tpu.memory_space<vmem>>, %arg6: memref<2x64x128xf32, #tpu.memory_space<vmem>>, %arg7: memref<2x1x128xf32, #tpu.memory_space<vmem>>, %arg8: memref<2x128x64xf32, #tpu.memory_space<vmem>>, %arg9: memref<2x1x64xf32, #tpu.memory_space<vmem>>, %arg10: memref<1x64xf32, #tpu.memory_space<vmem>>, %arg11: memref<1x64xf32, #tpu.memory_space<vmem>>, %arg12: memref<1x64xf32, #tpu.memory_space<vmem>>, %arg13: memref<1x1xf32, #tpu.memory_space<vmem>>, %arg14: memref<1x1x128xf32, #tpu.memory_space<vmem>>) attributes {dimension_semantics = [#tpu.dimension_semantics<parallel>], iteration_bounds = array<i64: 2>, scalar_prefetch = 0 : i64, scratch_operands = 0 : i64, tpu.core_type = #tpu.core_type<tc>, window_params = [{transform_indices = @transform_0, window_bounds = array<i64: 128, 32>}, {pipeline_mode = #tpu.pipeline_mode<synchronous>, transform_indices = @transform_1, window_bounds = array<i64: 32, 64>}, {pipeline_mode = #tpu.pipeline_mode<synchronous>, transform_indices = @transform_2, window_bounds = array<i64: 1, 64>}, {pipeline_mode = #tpu.pipeline_mode<synchronous>, transform_indices = @transform_3, window_bounds = array<i64: 2, 1, 64>}, {pipeline_mode = #tpu.pipeline_mode<synchronous>, transform_indices = @transform_4, window_bounds = array<i64: 2, 1, 64>}, {pipeline_mode = #tpu.pipeline_mode<synchronous>, transform_indices = @transform_5, window_bounds = array<i64: 2, 64, 128>}, {pipeline_mode = #tpu.pipeline_mode<synchronous>, transform_indices = @transform_6, window_bounds = array<i64: 2, 1, 128>}, {pipeline_mode = #tpu.pipeline_mode<synchronous>, transform_indices = @transform_7, window_bounds = array<i64: 2, 128, 64>}, {pipeline_mode = #tpu.pipeline_mode<synchronous>, transform_indices = @transform_8, window_bounds = array<i64: 2, 1, 64>}, {pipeline_mode = #tpu.pipeline_mode<synchronous>, transform_indices = @transform_9, window_bounds = array<i64: 1, 64>}, {pipeline_mode = #tpu.pipeline_mode<synchronous>, transform_indices = @transform_10, window_bounds = array<i64: 1, 64>}, {pipeline_mode = #tpu.pipeline_mode<synchronous>, transform_indices = @transform_11, window_bounds = array<i64: 1, 64>}, {pipeline_mode = #tpu.pipeline_mode<synchronous>, transform_indices = @transform_12, window_bounds = array<i64: 1, 1>}, {transform_indices = @transform_13, window_bounds = array<i64: 1, 1, 128>}]} {
    %c0 = arith.constant 0 : index
    %c0_0 = arith.constant 0 : index
    %0 = vector.load %arg1[%c0, %c0_0] : memref<128x32xf32, #tpu.memory_space<vmem>>, vector<128x32xf32>
    %c0_1 = arith.constant 0 : index
    %c0_2 = arith.constant 0 : index
    %1 = vector.load %arg2[%c0_1, %c0_2] : memref<32x64xf32, #tpu.memory_space<vmem>>, vector<32x64xf32>
    %cst = arith.constant dense<0.000000e+00> : vector<128x64xf32>
    %2 = tpu.matmul %0, %1, %cst {dimension_numbers = #tpu.dot_dimension_numbers<[1], [0], [0], [1], [0, 0, 1, 1], [], []>} : vector<128x32xf32>, vector<32x64xf32>, vector<128x64xf32> -> vector<128x64xf32>
    %c0_3 = arith.constant 0 : index
    %c0_4 = arith.constant 0 : index
    %3 = vector.load %arg3[%c0_3, %c0_4] : memref<1x64xf32, #tpu.memory_space<vmem>>, vector<1x64xf32>
    %4 = vector.broadcast %3 : vector<1x64xf32> to vector<128x64xf32>
    %5 = arith.addf %2, %4 : vector<128x64xf32>
    %cst_5 = arith.constant 5.000000e-01 : f32
    %6 = vector.broadcast %cst_5 : f32 to vector<128x64xf32>
    %7 = arith.mulf %6, %5 : vector<128x64xf32>
    %cst_6 = arith.constant 2.000000e+00 : f32
    %8 = math.sqrt %cst_6 : f32
    %cst_7 = arith.constant 1.000000e+00 : f32
    %9 = arith.divf %cst_7, %8 : f32
    %10 = vector.broadcast %9 : f32 to vector<128x64xf32>
    %11 = arith.mulf %5, %10 : vector<128x64xf32>
    %12 = math.erf %11 : vector<128x64xf32>
    %cst_8 = arith.constant 1.000000e+00 : f32
    %13 = vector.broadcast %cst_8 : f32 to vector<128x64xf32>
    %14 = arith.addf %13, %12 : vector<128x64xf32>
    %15 = arith.mulf %7, %14 : vector<128x64xf32>
    %c0_9 = arith.constant 0 : index
    %c0_10 = arith.constant 0 : index
    %c0_11 = arith.constant 0 : index
    %16 = vector.load %arg4[%c0_9, %c0_10, %c0_11] : memref<2x1x64xf32, #tpu.memory_space<vmem>>, vector<1x1x64xf32>
    %17 = vector.shape_cast %16 : vector<1x1x64xf32> to vector<1x64xf32>
    %c0_12 = arith.constant 0 : index
    %c0_13 = arith.constant 0 : index
    %c0_14 = arith.constant 0 : index
    %18 = vector.load %arg5[%c0_12, %c0_13, %c0_14] : memref<2x1x64xf32, #tpu.memory_space<vmem>>, vector<1x1x64xf32>
    %19 = vector.shape_cast %18 : vector<1x1x64xf32> to vector<1x64xf32>
    %cst_15 = arith.constant dense<0.000000e+00> : vector<128xf32>
    %20 = vector.multi_reduction <add>, %15, %cst_15 [1] : vector<128x64xf32> to vector<128xf32>
    %21 = vector.shape_cast %20 : vector<128xf32> to vector<128x1xf32>
    %cst_16 = arith.constant 6.400000e+01 : f32
    %22 = vector.broadcast %cst_16 : f32 to vector<128x1xf32>
    %23 = arith.divf %21, %22 : vector<128x1xf32>
    %24 = vector.broadcast %23 : vector<128x1xf32> to vector<128x64xf32>
    %25 = arith.subf %15, %24 : vector<128x64xf32>
    %26 = arith.mulf %25, %25 : vector<128x64xf32>
    %cst_17 = arith.constant dense<0.000000e+00> : vector<128xf32>
    %27 = vector.multi_reduction <add>, %26, %cst_17 [1] : vector<128x64xf32> to vector<128xf32>
    %28 = vector.shape_cast %27 : vector<128xf32> to vector<128x1xf32>
    %cst_18 = arith.constant 6.400000e+01 : f32
    %29 = vector.broadcast %cst_18 : f32 to vector<128x1xf32>
    %30 = arith.divf %28, %29 : vector<128x1xf32>
    %31 = vector.broadcast %23 : vector<128x1xf32> to vector<128x64xf32>
    %32 = arith.subf %15, %31 : vector<128x64xf32>
    %cst_19 = arith.constant 9.99999974E-6 : f32
    %33 = vector.broadcast %cst_19 : f32 to vector<128x1xf32>
    %34 = arith.addf %30, %33 : vector<128x1xf32>
    %35 = math.rsqrt %34 : vector<128x1xf32>
    %36 = vector.broadcast %35 : vector<128x1xf32> to vector<128x64xf32>
    %37 = arith.mulf %32, %36 : vector<128x64xf32>
    %38 = vector.broadcast %17 : vector<1x64xf32> to vector<128x64xf32>
    %39 = arith.mulf %37, %38 : vector<128x64xf32>
    %40 = vector.broadcast %19 : vector<1x64xf32> to vector<128x64xf32>
    %41 = arith.addf %39, %40 : vector<128x64xf32>
    %c0_20 = arith.constant 0 : index
    %c0_21 = arith.constant 0 : index
    %c0_22 = arith.constant 0 : index
    %42 = vector.load %arg6[%c0_20, %c0_21, %c0_22] : memref<2x64x128xf32, #tpu.memory_space<vmem>>, vector<1x64x128xf32>
    %43 = vector.shape_cast %42 : vector<1x64x128xf32> to vector<64x128xf32>
    %cst_23 = arith.constant dense<0.000000e+00> : vector<128x128xf32>
    %44 = tpu.matmul %41, %43, %cst_23 {dimension_numbers = #tpu.dot_dimension_numbers<[1], [0], [0], [1], [0, 0, 1, 1], [], []>} : vector<128x64xf32>, vector<64x128xf32>, vector<128x128xf32> -> vector<128x128xf32>
    %c0_24 = arith.constant 0 : index
    %c0_25 = arith.constant 0 : index
    %c0_26 = arith.constant 0 : index
    %45 = vector.load %arg7[%c0_24, %c0_25, %c0_26] : memref<2x1x128xf32, #tpu.memory_space<vmem>>, vector<1x1x128xf32>
    %46 = vector.shape_cast %45 : vector<1x1x128xf32> to vector<1x128xf32>
    %47 = vector.broadcast %46 : vector<1x128xf32> to vector<128x128xf32>
    %48 = arith.addf %44, %47 : vector<128x128xf32>
    %cst_27 = arith.constant 5.000000e-01 : f32
    %49 = vector.broadcast %cst_27 : f32 to vector<128x128xf32>
    %50 = arith.mulf %49, %48 : vector<128x128xf32>
    %cst_28 = arith.constant 2.000000e+00 : f32
    %51 = math.sqrt %cst_28 : f32
    %cst_29 = arith.constant 1.000000e+00 : f32
    %52 = arith.divf %cst_29, %51 : f32
    %53 = vector.broadcast %52 : f32 to vector<128x128xf32>
    %54 = arith.mulf %48, %53 : vector<128x128xf32>
    %55 = math.erf %54 : vector<128x128xf32>
    %cst_30 = arith.constant 1.000000e+00 : f32
    %56 = vector.broadcast %cst_30 : f32 to vector<128x128xf32>
    %57 = arith.addf %56, %55 : vector<128x128xf32>
    %58 = arith.mulf %50, %57 : vector<128x128xf32>
    %c0_31 = arith.constant 0 : index
    %c0_32 = arith.constant 0 : index
    %c0_33 = arith.constant 0 : index
    %59 = vector.load %arg8[%c0_31, %c0_32, %c0_33] : memref<2x128x64xf32, #tpu.memory_space<vmem>>, vector<1x128x64xf32>
    %60 = vector.shape_cast %59 : vector<1x128x64xf32> to vector<128x64xf32>
    %cst_34 = arith.constant dense<0.000000e+00> : vector<128x64xf32>
    %61 = tpu.matmul %58, %60, %cst_34 {dimension_numbers = #tpu.dot_dimension_numbers<[1], [0], [0], [1], [0, 0, 1, 1], [], []>} : vector<128x128xf32>, vector<128x64xf32>, vector<128x64xf32> -> vector<128x64xf32>
    %62 = arith.addf %15, %61 : vector<128x64xf32>
    %c0_35 = arith.constant 0 : index
    %c0_36 = arith.constant 0 : index
    %c0_37 = arith.constant 0 : index
    %63 = vector.load %arg9[%c0_35, %c0_36, %c0_37] : memref<2x1x64xf32, #tpu.memory_space<vmem>>, vector<1x1x64xf32>
    %64 = vector.shape_cast %63 : vector<1x1x64xf32> to vector<1x64xf32>
    %65 = vector.broadcast %64 : vector<1x64xf32> to vector<128x64xf32>
    %66 = arith.addf %62, %65 : vector<128x64xf32>
    %c1 = arith.constant 1 : index
    %c0_38 = arith.constant 0 : index
    %c0_39 = arith.constant 0 : index
    %67 = vector.load %arg4[%c1, %c0_38, %c0_39] : memref<2x1x64xf32, #tpu.memory_space<vmem>>, vector<1x1x64xf32>
    %68 = vector.shape_cast %67 : vector<1x1x64xf32> to vector<1x64xf32>
    %c1_40 = arith.constant 1 : index
    %c0_41 = arith.constant 0 : index
    %c0_42 = arith.constant 0 : index
    %69 = vector.load %arg5[%c1_40, %c0_41, %c0_42] : memref<2x1x64xf32, #tpu.memory_space<vmem>>, vector<1x1x64xf32>
    %70 = vector.shape_cast %69 : vector<1x1x64xf32> to vector<1x64xf32>
    %cst_43 = arith.constant dense<0.000000e+00> : vector<128xf32>
    %71 = vector.multi_reduction <add>, %66, %cst_43 [1] : vector<128x64xf32> to vector<128xf32>
    %72 = vector.shape_cast %71 : vector<128xf32> to vector<128x1xf32>
    %cst_44 = arith.constant 6.400000e+01 : f32
    %73 = vector.broadcast %cst_44 : f32 to vector<128x1xf32>
    %74 = arith.divf %72, %73 : vector<128x1xf32>
    %75 = vector.broadcast %74 : vector<128x1xf32> to vector<128x64xf32>
    %76 = arith.subf %66, %75 : vector<128x64xf32>
    %77 = arith.mulf %76, %76 : vector<128x64xf32>
    %cst_45 = arith.constant dense<0.000000e+00> : vector<128xf32>
    %78 = vector.multi_reduction <add>, %77, %cst_45 [1] : vector<128x64xf32> to vector<128xf32>
    %79 = vector.shape_cast %78 : vector<128xf32> to vector<128x1xf32>
    %cst_46 = arith.constant 6.400000e+01 : f32
    %80 = vector.broadcast %cst_46 : f32 to vector<128x1xf32>
    %81 = arith.divf %79, %80 : vector<128x1xf32>
    %82 = vector.broadcast %74 : vector<128x1xf32> to vector<128x64xf32>
    %83 = arith.subf %66, %82 : vector<128x64xf32>
    %cst_47 = arith.constant 9.99999974E-6 : f32
    %84 = vector.broadcast %cst_47 : f32 to vector<128x1xf32>
    %85 = arith.addf %81, %84 : vector<128x1xf32>
    %86 = math.rsqrt %85 : vector<128x1xf32>
    %87 = vector.broadcast %86 : vector<128x1xf32> to vector<128x64xf32>
    %88 = arith.mulf %83, %87 : vector<128x64xf32>
    %89 = vector.broadcast %68 : vector<1x64xf32> to vector<128x64xf32>
    %90 = arith.mulf %88, %89 : vector<128x64xf32>
    %91 = vector.broadcast %70 : vector<1x64xf32> to vector<128x64xf32>
    %92 = arith.addf %90, %91 : vector<128x64xf32>
    %c1_48 = arith.constant 1 : index
    %c0_49 = arith.constant 0 : index
    %c0_50 = arith.constant 0 : index
    %93 = vector.load %arg6[%c1_48, %c0_49, %c0_50] : memref<2x64x128xf32, #tpu.memory_space<vmem>>, vector<1x64x128xf32>
    %94 = vector.shape_cast %93 : vector<1x64x128xf32> to vector<64x128xf32>
    %cst_51 = arith.constant dense<0.000000e+00> : vector<128x128xf32>
    %95 = tpu.matmul %92, %94, %cst_51 {dimension_numbers = #tpu.dot_dimension_numbers<[1], [0], [0], [1], [0, 0, 1, 1], [], []>} : vector<128x64xf32>, vector<64x128xf32>, vector<128x128xf32> -> vector<128x128xf32>
    %c1_52 = arith.constant 1 : index
    %c0_53 = arith.constant 0 : index
    %c0_54 = arith.constant 0 : index
    %96 = vector.load %arg7[%c1_52, %c0_53, %c0_54] : memref<2x1x128xf32, #tpu.memory_space<vmem>>, vector<1x1x128xf32>
    %97 = vector.shape_cast %96 : vector<1x1x128xf32> to vector<1x128xf32>
    %98 = vector.broadcast %97 : vector<1x128xf32> to vector<128x128xf32>
    %99 = arith.addf %95, %98 : vector<128x128xf32>
    %cst_55 = arith.constant 5.000000e-01 : f32
    %100 = vector.broadcast %cst_55 : f32 to vector<128x128xf32>
    %101 = arith.mulf %100, %99 : vector<128x128xf32>
    %cst_56 = arith.constant 2.000000e+00 : f32
    %102 = math.sqrt %cst_56 : f32
    %cst_57 = arith.constant 1.000000e+00 : f32
    %103 = arith.divf %cst_57, %102 : f32
    %104 = vector.broadcast %103 : f32 to vector<128x128xf32>
    %105 = arith.mulf %99, %104 : vector<128x128xf32>
    %106 = math.erf %105 : vector<128x128xf32>
    %cst_58 = arith.constant 1.000000e+00 : f32
    %107 = vector.broadcast %cst_58 : f32 to vector<128x128xf32>
    %108 = arith.addf %107, %106 : vector<128x128xf32>
    %109 = arith.mulf %101, %108 : vector<128x128xf32>
    %c1_59 = arith.constant 1 : index
    %c0_60 = arith.constant 0 : index
    %c0_61 = arith.constant 0 : index
    %110 = vector.load %arg8[%c1_59, %c0_60, %c0_61] : memref<2x128x64xf32, #tpu.memory_space<vmem>>, vector<1x128x64xf32>
    %111 = vector.shape_cast %110 : vector<1x128x64xf32> to vector<128x64xf32>
    %cst_62 = arith.constant dense<0.000000e+00> : vector<128x64xf32>
    %112 = tpu.matmul %109, %111, %cst_62 {dimension_numbers = #tpu.dot_dimension_numbers<[1], [0], [0], [1], [0, 0, 1, 1], [], []>} : vector<128x128xf32>, vector<128x64xf32>, vector<128x64xf32> -> vector<128x64xf32>
    %113 = arith.addf %66, %112 : vector<128x64xf32>
    %c1_63 = arith.constant 1 : index
    %c0_64 = arith.constant 0 : index
    %c0_65 = arith.constant 0 : index
    %114 = vector.load %arg9[%c1_63, %c0_64, %c0_65] : memref<2x1x64xf32, #tpu.memory_space<vmem>>, vector<1x1x64xf32>
    %115 = vector.shape_cast %114 : vector<1x1x64xf32> to vector<1x64xf32>
    %116 = vector.broadcast %115 : vector<1x64xf32> to vector<128x64xf32>
    %117 = arith.addf %113, %116 : vector<128x64xf32>
    %c0_66 = arith.constant 0 : index
    %c0_67 = arith.constant 0 : index
    %118 = vector.load %arg10[%c0_66, %c0_67] : memref<1x64xf32, #tpu.memory_space<vmem>>, vector<1x64xf32>
    %c0_68 = arith.constant 0 : index
    %c0_69 = arith.constant 0 : index
    %119 = vector.load %arg11[%c0_68, %c0_69] : memref<1x64xf32, #tpu.memory_space<vmem>>, vector<1x64xf32>
    %cst_70 = arith.constant dense<0.000000e+00> : vector<128xf32>
    %120 = vector.multi_reduction <add>, %117, %cst_70 [1] : vector<128x64xf32> to vector<128xf32>
    %121 = vector.shape_cast %120 : vector<128xf32> to vector<128x1xf32>
    %cst_71 = arith.constant 6.400000e+01 : f32
    %122 = vector.broadcast %cst_71 : f32 to vector<128x1xf32>
    %123 = arith.divf %121, %122 : vector<128x1xf32>
    %124 = vector.broadcast %123 : vector<128x1xf32> to vector<128x64xf32>
    %125 = arith.subf %117, %124 : vector<128x64xf32>
    %126 = arith.mulf %125, %125 : vector<128x64xf32>
    %cst_72 = arith.constant dense<0.000000e+00> : vector<128xf32>
    %127 = vector.multi_reduction <add>, %126, %cst_72 [1] : vector<128x64xf32> to vector<128xf32>
    %128 = vector.shape_cast %127 : vector<128xf32> to vector<128x1xf32>
    %cst_73 = arith.constant 6.400000e+01 : f32
    %129 = vector.broadcast %cst_73 : f32 to vector<128x1xf32>
    %130 = arith.divf %128, %129 : vector<128x1xf32>
    %131 = vector.broadcast %123 : vector<128x1xf32> to vector<128x64xf32>
    %132 = arith.subf %117, %131 : vector<128x64xf32>
    %cst_74 = arith.constant 9.99999974E-6 : f32
    %133 = vector.broadcast %cst_74 : f32 to vector<128x1xf32>
    %134 = arith.addf %130, %133 : vector<128x1xf32>
    %135 = math.rsqrt %134 : vector<128x1xf32>
    %136 = vector.broadcast %135 : vector<128x1xf32> to vector<128x64xf32>
    %137 = arith.mulf %132, %136 : vector<128x64xf32>
    %138 = vector.broadcast %118 : vector<1x64xf32> to vector<128x64xf32>
    %139 = arith.mulf %137, %138 : vector<128x64xf32>
    %140 = vector.broadcast %119 : vector<1x64xf32> to vector<128x64xf32>
    %141 = arith.addf %139, %140 : vector<128x64xf32>
    %c0_75 = arith.constant 0 : index
    %c0_76 = arith.constant 0 : index
    %142 = vector.load %arg12[%c0_75, %c0_76] : memref<1x64xf32, #tpu.memory_space<vmem>>, vector<1x64xf32>
    %143 = vector.broadcast %142 : vector<1x64xf32> to vector<128x64xf32>
    %144 = arith.mulf %141, %143 : vector<128x64xf32>
    %cst_77 = arith.constant dense<0.000000e+00> : vector<128xf32>
    %145 = vector.multi_reduction <add>, %144, %cst_77 [1] : vector<128x64xf32> to vector<128xf32>
    %146 = vector.shape_cast %145 : vector<128xf32> to vector<1x1x128xf32>
    %c0_78 = arith.constant 0 : index
    %c0_79 = arith.constant 0 : index
    %147 = vector.load %arg13[%c0_78, %c0_79] : memref<1x1xf32, #tpu.memory_space<vmem>>, vector<1x1xf32>
    %148 = vector.shape_cast %147 : vector<1x1xf32> to vector<1x1x1xf32>
    %149 = vector.broadcast %148 : vector<1x1x1xf32> to vector<1x1x128xf32>
    %150 = arith.addf %146, %149 : vector<1x1x128xf32>
    %c0_80 = arith.constant 0 : index
    %c0_81 = arith.constant 0 : index
    %c0_82 = arith.constant 0 : index
    %151 = vector.load %arg14[%c0_80, %c0_81, %c0_82] : memref<1x1x128xf32, #tpu.memory_space<vmem>>, vector<1x1x128xf32>
    tpu.vector_store %arg14[%c0_80, %c0_81, %c0_82], %150 {strides = array<i32>} : memref<1x1x128xf32, #tpu.memory_space<vmem>>, vector<1x1x128xf32>,
    return
  }
  func.func @transform_0(%arg0: i32) -> (i32, i32) {
    %c0_i32 = arith.constant 0 : i32
    %c0_i32_0 = arith.constant 0 : i32
    return %arg0, %c0_i32 : i32, i32
  }
  func.func @transform_1(%arg0: i32) -> (i32, i32) {
    %c0_i32 = arith.constant 0 : i32
    %c0_i32_0 = arith.constant 0 : i32
    %c0_i32_1 = arith.constant 0 : i32
    return %c0_i32, %c0_i32_0 : i32, i32
  }
  func.func @transform_2(%arg0: i32) -> (i32, i32) {
    %c0_i32 = arith.constant 0 : i32
    %c0_i32_0 = arith.constant 0 : i32
    %c0_i32_1 = arith.constant 0 : i32
    return %c0_i32, %c0_i32_0 : i32, i32
  }
  func.func @transform_3(%arg0: i32) -> (i32, i32, i32) {
    %c0_i32 = arith.constant 0 : i32
    %c0_i32_0 = arith.constant 0 : i32
    %c0_i32_1 = arith.constant 0 : i32
    %c0_i32_2 = arith.constant 0 : i32
    return %c0_i32, %c0_i32_0, %c0_i32_1 : i32, i32, i32
  }
  func.func @transform_4(%arg0: i32) -> (i32, i32, i32) {
    %c0_i32 = arith.constant 0 : i32
    %c0_i32_0 = arith.constant 0 : i32
    %c0_i32_1 = arith.constant 0 : i32
    %c0_i32_2 = arith.constant 0 : i32
    return %c0_i32, %c0_i32_0, %c0_i32_1 : i32, i32, i32
  }
  func.func @transform_5(%arg0: i32) -> (i32, i32, i32) {
    %c0_i32 = arith.constant 0 : i32
    %c0_i32_0 = arith.constant 0 : i32
    %c0_i32_1 = arith.constant 0 : i32
    %c0_i32_2 = arith.constant 0 : i32
    return %c0_i32, %c0_i32_0, %c0_i32_1 : i32, i32, i32
  }
  func.func @transform_6(%arg0: i32) -> (i32, i32, i32) {
    %c0_i32 = arith.constant 0 : i32
    %c0_i32_0 = arith.constant 0 : i32
    %c0_i32_1 = arith.constant 0 : i32
    %c0_i32_2 = arith.constant 0 : i32
    return %c0_i32, %c0_i32_0, %c0_i32_1 : i32, i32, i32
  }
  func.func @transform_7(%arg0: i32) -> (i32, i32, i32) {
    %c0_i32 = arith.constant 0 : i32
    %c0_i32_0 = arith.constant 0 : i32
    %c0_i32_1 = arith.constant 0 : i32
    %c0_i32_2 = arith.constant 0 : i32
    return %c0_i32, %c0_i32_0, %c0_i32_1 : i32, i32, i32
  }
  func.func @transform_8(%arg0: i32) -> (i32, i32, i32) {
    %c0_i32 = arith.constant 0 : i32
    %c0_i32_0 = arith.constant 0 : i32
    %c0_i32_1 = arith.constant 0 : i32
    %c0_i32_2 = arith.constant 0 : i32
    return %c0_i32, %c0_i32_0, %c0_i32_1 : i32, i32, i32
  }
  func.func @transform_9(%arg0: i32) -> (i32, i32) {
    %c0_i32 = arith.constant 0 : i32
    %c0_i32_0 = arith.constant 0 : i32
    %c0_i32_1 = arith.constant 0 : i32
    return %c0_i32, %c0_i32_0 : i32, i32
  }
  func.func @transform_10(%arg0: i32) -> (i32, i32) {
    %c0_i32 = arith.constant 0 : i32
    %c0_i32_0 = arith.constant 0 : i32
    %c0_i32_1 = arith.constant 0 : i32
    return %c0_i32, %c0_i32_0 : i32, i32
  }
  func.func @transform_11(%arg0: i32) -> (i32, i32) {
    %c0_i32 = arith.constant 0 : i32
    %c0_i32_0 = arith.constant 0 : i32
    %c0_i32_1 = arith.constant 0 : i32
    return %c0_i32, %c0_i32_0 : i32, i32
  }
  func.func @transform_12(%arg0: i32) -> (i32, i32) {
    %c0_i32 = arith.constant 0 : i32
    %c0_i32_0 = arith.constant 0 : i32
    %c0_i32_1 = arith.constant 0 : i32
    return %c0_i32, %c0_i32_0 : i32, i32
  }
  func.func @transform_13(%arg0: i32) -> (i32, i32, i32) {
    %c0_i32 = arith.constant 0 : i32
    %c0_i32_0 = arith.constant 0 : i32
    %c0_i32_1 = arith.constant 0 : i32
    return %arg0, %c0_i32, %c0_i32_0 : i32, i32, i32
  }
}

</mosaic_0001>

<bundles_post_ra>
// kernel: tpu_custom_call.1
= control target key start
LH: loop header
LB: loop body
LE: loop exit
PB: predicated region body
PF: predicated region fallthrough
CT: control target
= control target key end

     0   :  { %s4991_s0 = inlined_call_operand.vmem [shape: f32[256,32], index: 0, kind: input, shape index: {}]   ;;  %s4992_s1 = inlined_call_operand.vmem [shape: f32[32,64], index: 1, kind: input, shape index: {}]   ;;  %s4993_s2 = inlined_call_operand.vmem [shape: f32[1,64], index: 2, kind: input, shape index: {}]   ;;  %s4994_s3 = inlined_call_operand.vmem [shape: f32[2,1,64], index: 3, kind: input, shape index: {}]   ;;  %s4995_s4 = inlined_call_operand.vmem [shape: f32[2,1,64], index: 4, kind: input, shape index: {}]   ;;  %s4996_s5 = inlined_call_operand.vmem [shape: f32[2,64,128], index: 5, kind: input, shape index: {}]   ;;  %s4997_s6 = inlined_call_operand.vmem [shape: f32[2,1,128], index: 6, kind: input, shape index: {}]   ;;  %s4998_s7 = inlined_call_operand.vmem [shape: f32[2,128,64], index: 7, kind: input, shape index: {}]   ;;  %s4999_s8 = inlined_call_operand.vmem [shape: f32[2,1,64], index: 8, kind: input, shape index: {}]   ;;  %s5000_s9 = inlined_call_operand.vmem [shape: f32[1,64], index: 9, kind: input, shape index: {}]   ;;  %s5001_s10 = inlined_call_operand.vmem [shape: f32[1,64], index: 10, kind: input, shape index: {}]   ;;  %s5002_s11 = inlined_call_operand.vmem [shape: f32[1,64], index: 11, kind: input, shape index: {}]   ;;  %s5003_s12 = inlined_call_operand.<no memory space> [shape: f32[1,1], index: 12, kind: input, shape index: {}]   ;;  %s5004_s13 = inlined_call_operand.hbm [shape: f32[2,1,128], index: 13, kind: output, shape index: {}]  }
   0x1   :  { %5005 = sst [smem:[#allocation6_spill]] %s4991_s0  ;;  %v18_v0 = vstv %s5003_s12 }
   0x2   :  { %19 = vst [vmem:[#allocation2] sm:$0x1] %v18_v0 }
   0x3   :  { %20 = vsyncpa [#allocation4], 0 }
   0x4   :  { %22 = vsyncpa [#allocation4 + $0x1], 0  ;;  %s3729_s27 = smov 0   ;;  %s3731_s28 = smov 0  }
   0x5   :  { %s3733_s29 = smov 0   ;;  %s3735_s30 = smov 0  }
   0x6 LB: > { %s2782_s12 = sadd.s32 4294967295, %s3652_s30   ;;  %s2783_s14 = sadd.s32 4294967294, %s3652_s30   ;;  %s3652_s30 = sphi %s3735_s30, %s5012_s30   ;;  %s3648_s29 = sphi %s3733_s29, %s5011_s29   ;;  %s3644_s28 = sphi %s3731_s28, %s5010_s28   ;;  %s3640_s27 = sphi %s3729_s27, %s5009_s27  }
   0x7   : > { %s3752_s15 = sadd.s32 1, %s3652_s30   ;;  %s313_s16 = sadd.s32 1, %s3648_s29 }
   0x8   : > { %s310_s17 = ssub.s32 %s3652_s30, %s3752_s15  ;;  %p323_p0 = scmp.ne.s32.totalorder %s3648_s29, %s3644_s28 }
   0x9   : > { %p311_p1 = scmp.eq.s32.totalorder %s310_s17, 0  ;;  %p324_p2 = scmp.eq.s32.totalorder %s2782_s12, 1 }
   0xa   : > { %p329_p3 = scmp.ne.s32.totalorder %s3644_s28, %s3640_s27  ;;  %p330_p4 = scmp.eq.s32.totalorder %s2783_s14, 1 }
   0xb   : > { %s3762_s18 = scalar_select %p311_p1, %s3648_s29, %s313_s16  }
   0xc   : > { %p3764_p5 = por %p324_p2, %p323_p0  ;;  %p3768_p6 = por %p330_p4, %p329_p3 }
   0xd   : > { %p2786_p7 = scmp.ge.s32.totalorder %s3652_s30, 1  ;;  %p393_p8 = scmp.lt.s32.totalorder %s3652_s30, 3 }
   0xf   : > { %p394_p9 = pnand %p2786_p7, %p393_p8 }
  0x10   : > { %v458_v1 = vld [vmem:[%s4992_s1] sm:$0xff] (!%p394_p9)  ;;  %v459_v2 = vld [vmem:[%s4992_s1 + $0x8] sm:$0xff] (!%p394_p9)  ;;  %v460_v3 = vld [vmem:[%s4992_s1 + $0x10] sm:$0xff] (!%p394_p9)  ;;  %s3783_s14 = sshll.u32 (!%p394_p9), %s2782_s12, 4  ;;  %vm469_vm0 = vcmask (!%p394_p9), 261120   ;;  %s5008_s0 = sld [smem:[#allocation6_spill]] (!%p394_p9) }
  0x11   : > { %397 = sbr.rel (%p394_p9) target bundleno = 2334 (0x91e), region = 72  ;;  %v3236_v4 = vpack.c.bf16 (!%p394_p9), %v459_v2, %v458_v1  ;;  %v461_v5 = vld [vmem:[%s4992_s1 + $0x18] sm:$0xff] (!%p394_p9)  ;;  %p437_p10 = scmp.lt.s32.totalorder (!%p394_p9), %s3783_s14, 31  ;;  %v3830_v23 = vld [vmem:[%s4993_s2] ss:$0 sm:$0xff] (!%p394_p9)  ;;  %vm745_vm1 = vcmask (!%p394_p9), 523264  }
  0x12   : > { %v3240_v6 = vpack.c.bf16 (!%p394_p9), %v461_v5, %v460_v3  ;;  %vm2613_vm2 = vcmask (!%p394_p9), 130112   ;;  %vm2620_vm3 = vcmask (!%p394_p9), 195712   ;;  %vm2627_vm4 = vcmask (!%p394_p9), 261312   ;;  %s4947_s23 = scalar_lea.hbm (!%p394_p9), %s5004_s13, %s3783_s14  ;;  %s3655_s25 = smov (!%p394_p9), [#allocation3]  }
  0x13   : > { %3237 = vmatprep.subr.bf16.mxu0 (!%p394_p9), %v3236_v4  ;;  %vm2634_vm5 = vcmask (!%p394_p9), 326912   ;;  %vm2641_vm6 = vcmask (!%p394_p9), 392512   ;;  %vm2648_vm7 = vcmask (!%p394_p9), 458112   ;;  %vm2655_vm8 = vcmask (!%p394_p9), 523712   ;;  %s3594_s26 = sshll.u32 (!%p394_p9), %s3655_s25, 4  ;;  %s3595_s26 = int_to_ptr.vmem [resolvable:$false] %s3594_s26 }
  0x14   : > { %3239 = vmatpush3.bf16.msra.mxu0 (!%p394_p9), %v3236_v4  ;;  %vm2662_vm9 = vcmask (!%p394_p9), 589312   ;;  %vm2669_vm10 = vcmask (!%p394_p9), 654912   ;;  %vm2676_vm11 = vcmask (!%p394_p9), 720512   ;;  %vm2683_vm12 = vcmask (!%p394_p9), 786112  }
  0x15   : > { %3241 = vmatprep.subr.bf16.mxu0 (!%p394_p9), %v3240_v6  ;;  %vm2690_vm13 = vcmask (!%p394_p9), 851712   ;;  %vm2697_vm14 = vcmask (!%p394_p9), 917312   ;;  %vm2704_vm15 = vcmask (!%p394_p9), 982912  }
  0x18   : > { %s438_s21 = scalar_select %p437_p10, %s3783_s14, 31  ;;  %3243 = vmatpush3.bf16.msra.mxu0 %v3240_v6 }
  0x1a   : > { %s2788_s22 = sshll.u32 %s438_s21, 3  ;;  %s3596_s21 = scalar_lea.vmem %s3595_s26, 32 }
  0x1b   : > { %s3793_s12 = scalar_lea.vmem %s5008_s0, %s2788_s22  ;;  %s434_s0 = sand.u32 1, %s3644_s28  }
  0x1c   : > { %v442_v7 = vld [vmem:[%s3793_s12] sm:$0xff]  ;;  %v443_v8 = vld [vmem:[%s3793_s12 + $0x8] sm:$0xff]  ;;  %v444_v9 = vld [vmem:[%s3793_s12 + $0x10] sm:$0xff]  ;;  %s435_s16 = scalar_lea.vmem [#allocation3], %s434_s0  ;;  %s2716_s24 = scalar_lea.sflag [#allocation4], %s434_s0 }
  0x1d   : > { %3020 = vmatprep.mubr.msk.f32.mxu0 %vm469_vm0, %v442_v7  ;;  %v445_v10 = vld [vmem:[%s3793_s12 + $0x18] sm:$0xff]  ;;  %v446_v11 = vld [vmem:[%s3793_s12 + $0x20] sm:$0xff]  ;;  %v447_v12 = vld [vmem:[%s3793_s12 + $0x28] sm:$0xff]  ;;  %s2728_s17 = sshll.u32 %s435_s16, 4  ;;  %s4949_s17 = int_to_ptr.vmem [resolvable:$true] %s2728_s17 }
  0x1e   : > { %3021 = vmatmul.mubr.msk.f32.vlgmr.msra.gmra.mrb[0].mxu0 %vm469_vm0, %v443_v8  ;;  %v448_v13 = vld [vmem:[%s3793_s12 + $0x30] sm:$0xff]  ;;  %v449_v14 = vld [vmem:[%s3793_s12 + $0x38] sm:$0xff]  ;;  %v450_v15 = vld [vmem:[%s3793_s12 + $0x40] sm:$0xff]  ;;  %p3597_p0 = scmp.lt.s32.totalorder %s4949_s17, %s3595_s26 }
  0x1f   : > { %3023 = vmatprep.mubr.msk.f32.mxu0 %vm469_vm0, %v444_v9  ;;  %v451_v16 = vld [vmem:[%s3793_s12 + $0x48] sm:$0xff]  ;;  %v452_v17 = vld [vmem:[%s3793_s12 + $0x50] sm:$0xff]  ;;  %v453_v18 = vld [vmem:[%s3793_s12 + $0x58] sm:$0xff] }
  0x20   : > { %v454_v19 = vld [vmem:[%s3793_s12 + $0x60] sm:$0xff]  ;;  %v455_v20 = vld [vmem:[%s3793_s12 + $0x68] sm:$0xff]  ;;  %v456_v21 = vld [vmem:[%s3793_s12 + $0x70] sm:$0xff] }
  0x21   : > { %v457_v22 = vld [vmem:[%s3793_s12 + $0x78] sm:$0xff]  ;;  %s3590_s12 = scalar_lea.vmem %s4949_s17, 16 }
  0x22   : > { %3024 = vmatmul.mubr.msk.f32.gmra.mrb[2].mxu0 %vm469_vm0, %v445_v10  ;;  %p3591_p11 = scmp.ne.s32.totalorder %s4949_s17, %s3590_s12  ;;  %p3598_p1 = scmp.lt.s32.totalorder %s3596_s21, %s3590_s12 }
  0x23   : > { %3026 = vmatprep.mubr.msk.f32.mxu0 %vm469_vm0, %v446_v11 }
  0x24   : > { %p3592_p12 = pnand %p3591_p11, %p3764_p5  ;;  %p3599_p2 = por %p3598_p1, %p3597_p0 }
  0x26   : > { %3027 = vmatmul.mubr.msk.f32.gmra.mrb[4].mxu0 %vm469_vm0, %v447_v12  ;;  %p3593_p13 = pneg %p3592_p12 }
  0x27   : > { %3029 = vmatprep.mubr.msk.f32.mxu0 %vm469_vm0, %v448_v13 }
  0x28   : > { %p3600_p3 = pnand %p3599_p2, %p3593_p13 }
  0x2a   : > { %3030 = vmatmul.mubr.msk.f32.gmra.mrb[6].mxu0 %vm469_vm0, %v449_v14 }
  0x2b   : > { %3032 = vmatprep.mubr.msk.f32.mxu0 %vm469_vm0, %v450_v15 }
  0x2e   : > { %3033 = vmatmul.mubr.msk.f32.gmra.mrb[8].mxu0 %vm469_vm0, %v451_v16 }
  0x2f   : > { %3035 = vmatprep.mubr.msk.f32.mxu0 %vm469_vm0, %v452_v17 }
  0x32   : > { %3036 = vmatmul.mubr.msk.f32.gmra.mrb[10].mxu0 %vm469_vm0, %v453_v18 }
  0x33   : > { %3038 = vmatprep.mubr.msk.f32.mxu0 %vm469_vm0, %v454_v19 }
  0x36   : > { %3039 = vmatmul.mubr.msk.f32.gmra.mrb[12].mxu0 %vm469_vm0, %v455_v20 }
  0x37   : > { %3041 = vmatprep.mubr.msk.f32.mxu0 %vm469_vm0, %v456_v21 }
  0x3a   : > { %3042 = vmatmul.mubr.msk.f32.gmra.mrb[14].mxu0 %vm469_vm0, %v457_v22  ;;  %vm2711_vm0 = vcmask 1048512  }
  0xf1   : > { %v3022_v24 = vpop.f32.mrb[0].mxu0 }
  0xf2   : > { %v590_v25 = vadd.f32 %v3022_v24, %v3830_v23  ;;  %v584_v26 = vpop.f32.mrb[1].mxu0 }
  0xf3   : > { %v585_v27 = vadd.f32 %v3830_v23, %v584_v26 }
  0xf4   : > { %v680_v28 = vmul.f32 0.70710677, %v590_v25  ;;  %v664_v56 = vmul.f32 0.5, %v590_v25 }
  0xf5   : > { %v679_v29 = vmul.f32 0.70710677, %v585_v27  ;;  %v3025_v30 = vpop.f32.mrb[2].mxu0  ;;  %v663_v52 = vmul.f32 0.5, %v585_v27 }
  0xf6   : > { %3398 = verf.f32 %v680_v28  ;;  %v600_v31 = vadd.f32 %v3025_v30, %v3830_v23  ;;  %v594_v32 = vpop.f32.mrb[3].mxu0 }
  0xf7   : > { %3400 = verf.f32 %v679_v29  ;;  %v595_v33 = vadd.f32 %v3830_v23, %v594_v32 }
  0xf8   : > { %v682_v34 = vmul.f32 0.70710677, %v600_v31  ;;  %v666_v7 = vmul.f32 0.5, %v600_v31 }
  0xf9   : > { %v681_v35 = vmul.f32 0.70710677, %v595_v33  ;;  %v3028_v36 = vpop.f32.mrb[4].mxu0  ;;  %v665_v0 = vmul.f32 0.5, %v595_v33 }
  0xfa   : > { %3402 = verf.f32 %v682_v34  ;;  %v610_v37 = vadd.f32 %v3028_v36, %v3830_v23  ;;  %v604_v38 = vpop.f32.mrb[5].mxu0 }
  0xfb   : > { %3404 = verf.f32 %v681_v35  ;;  %v605_v39 = vadd.f32 %v3830_v23, %v604_v38 }
  0xfc   : > { %v684_v40 = vmul.f32 0.70710677, %v610_v37  ;;  %v668_v24 = vmul.f32 0.5, %v610_v37 }
  0xfd   : > { %v683_v41 = vmul.f32 0.70710677, %v605_v39  ;;  %v3031_v42 = vpop.f32.mrb[6].mxu0  ;;  %v667_v10 = vmul.f32 0.5, %v605_v39 }
  0xfe   : > { %3406 = verf.f32 %v684_v40  ;;  %v620_v43 = vadd.f32 %v3031_v42, %v3830_v23  ;;  %v614_v44 = vpop.f32.mrb[7].mxu0 }
  0xff   : > { %3408 = verf.f32 %v683_v41  ;;  %v615_v45 = vadd.f32 %v3830_v23, %v614_v44 }
 0x100   : > { %v3399_v46 = vpop.eup %3398  ;;  %v686_v47 = vmul.f32 0.70710677, %v620_v43  ;;  %v670_v28 = vmul.f32 0.5, %v620_v43 }
 0x101   : > { %v3401_v48 = vpop.eup %3400  ;;  %v712_v49 = vadd.f32 1.0, %v3399_v46  ;;  %v685_v50 = vmul.f32 0.70710677, %v615_v45  ;;  %v3034_v51 = vpop.f32.mrb[8].mxu0  ;;  %v669_v29 = vmul.f32 0.5, %v615_v45 }
 0x102   : > { %v711_v53 = vadd.f32 1.0, %v3401_v48  ;;  %3410 = verf.f32 %v686_v47  ;;  %v630_v54 = vadd.f32 %v3034_v51, %v3830_v23  ;;  %v624_v55 = vpop.f32.mrb[9].mxu0 }
 0x103   : > { %3412 = verf.f32 %v685_v50  ;;  %v3842_v57 = vadd.f32 %v3830_v23, %v624_v55  ;;  %v3846_v62 = vmul.f32 %v712_v49, %v664_v56 }
 0x104   : > { %v3403_v58 = vpop.eup %3402  ;;  %v688_v59 = vmul.f32 0.70710677, %v630_v54  ;;  %v3844_v60 = vmul.f32 %v711_v53, %v663_v52  ;;  %v672_v41 = vmul.f32 0.5, %v630_v54 }
 0x105   : > { %v3405_v61 = vpop.eup %3404  ;;  %v714_v63 = vadd.f32 1.0, %v3403_v58  ;;  %v687_v1 = vmul.f32 0.70710677, %v3842_v57  ;;  %v3037_v2 = vpop.f32.mrb[10].mxu0  ;;  %v749_v18 = vsel %vm745_vm1, %v3846_v62, 0.0  ;;  %v671_v46 = vmul.f32 0.5, %v3842_v57 }
 0x106   : > { %v713_v3 = vadd.f32 1.0, %v3405_v61  ;;  %3414 = verf.f32 %v688_v59  ;;  %v640_v4 = vadd.f32 %v3037_v2, %v3830_v23  ;;  %v634_v5 = vpop.f32.mrb[11].mxu0  ;;  %v746_v6 = vsel %vm745_vm1, %v3844_v60, 0.0 }
 0x107   : > { %3416 = verf.f32 %v687_v1  ;;  %v635_v8 = vadd.f32 %v3830_v23, %v634_v5  ;;  %747 = vadd.xlane.f32.xlu0 %v746_v6  ;;  %v3855_v14 = vmul.f32 %v714_v63, %v666_v7 }
 0x108   : > { %v3407_v9 = vpop.eup %3406  ;;  %v690_v11 = vmul.f32 0.70710677, %v640_v4  ;;  %v3853_v12 = vmul.f32 %v713_v3, %v665_v0  ;;  %v674_v53 = vmul.f32 0.5, %v640_v4 }
 0x109   : > { %v3409_v13 = vpop.eup %3408  ;;  %v716_v15 = vadd.f32 1.0, %v3407_v9  ;;  %v689_v16 = vmul.f32 0.70710677, %v635_v8  ;;  %v3040_v17 = vpop.f32.mrb[12].mxu0  ;;  %v755_v36 = vsel %vm745_vm1, %v3855_v14, 0.0  ;;  %v673_v57 = vmul.f32 0.5, %v635_v8 }
 0x10a   : > { %v715_v19 = vadd.f32 1.0, %v3409_v13  ;;  %3418 = verf.f32 %v690_v11  ;;  %v650_v20 = vadd.f32 %v3040_v17, %v3830_v23  ;;  %v644_v21 = vpop.f32.mrb[13].mxu0  ;;  %v752_v22 = vsel %vm745_vm1, %v3853_v12, 0.0 }
 0x10b   : > { %3420 = verf.f32 %v689_v16  ;;  %v645_v25 = vadd.f32 %v3830_v23, %v644_v21  ;;  %753 = vadd.xlane.f32.xlu1 %v752_v22  ;;  %750 = vadd.xlane.f32.xlu0 %v749_v18  ;;  %v3865_v32 = vmul.f32 %v716_v15, %v668_v24 }
 0x10c   : > { %v3411_v26 = vpop.eup %3410  ;;  %v3863_v27 = vmul.f32 %v715_v19, %v667_v10  ;;  %v692_v30 = vmul.f32 0.70710677, %v650_v20  ;;  %v676_v1 = vmul.f32 0.5, %v650_v20 }
 0x10d   : > { %v3413_v31 = vpop.eup %3412  ;;  %v718_v33 = vadd.f32 1.0, %v3411_v26  ;;  %v691_v34 = vmul.f32 0.70710677, %v645_v25  ;;  %v3043_v35 = vpop.f32.mrb[14].mxu0  ;;  %v761_v52 = vsel %vm745_vm1, %v3865_v32, 0.0  ;;  %v675_v5 = vmul.f32 0.5, %v645_v25 }
 0x10e   : > { %v717_v37 = vadd.f32 1.0, %v3413_v31  ;;  %3422 = verf.f32 %v692_v30  ;;  %v660_v38 = vadd.f32 %v3043_v35, %v3830_v23  ;;  %v654_v39 = vpop.f32.mrb[15].mxu0  ;;  %v758_v40 = vsel %vm745_vm1, %v3863_v27, 0.0 }
 0x10f   : > { %3424 = verf.f32 %v691_v34  ;;  %v655_v42 = vadd.f32 %v3830_v23, %v654_v39  ;;  %756 = vadd.xlane.f32.xlu1 %v755_v36  ;;  %759 = vadd.xlane.f32.xlu0 %v758_v40  ;;  %v3873_v44 = vmul.f32 %v718_v33, %v670_v28 }
 0x110   : > { %v3415_v43 = vpop.eup %3414  ;;  %v3875_v45 = vmul.f32 %v717_v37, %v669_v29  ;;  %v694_v47 = vmul.f32 0.70710677, %v660_v38  ;;  %v678_v11 = vmul.f32 0.5, %v660_v38 }
 0x111   : > { %v3417_v48 = vpop.eup %3416  ;;  %v720_v49 = vadd.f32 1.0, %v3415_v43  ;;  %v693_v50 = vmul.f32 0.70710677, %v655_v42  ;;  %v767_v58 = vsel %vm745_vm1, %v3873_v44, 0.0  ;;  %v677_v17 = vmul.f32 0.5, %v655_v42 }
 0x112   : > { %v719_v51 = vadd.f32 1.0, %v3417_v48  ;;  %3426 = verf.f32 %v694_v47  ;;  %v764_v23 = vsel %vm745_vm1, %v3875_v45, 0.0 }
 0x113   : > { %3428 = verf.f32 %v693_v50  ;;  %762 = vadd.xlane.f32.xlu1 %v761_v52  ;;  %765 = vadd.xlane.f32.xlu0 %v764_v23  ;;  %v3882_v55 = vmul.f32 %v720_v49, %v672_v41 }
 0x114   : > { %v3419_v54 = vpop.eup %3418  ;;  %v3884_v56 = vmul.f32 %v719_v51, %v671_v46 }
 0x115   : > { %v3421_v59 = vpop.eup %3420  ;;  %v722_v61 = vadd.f32 1.0, %v3419_v54  ;;  %v773_v6 = vsel %vm745_vm1, %v3882_v55, 0.0 }
 0x116   : > { %v721_v63 = vadd.f32 1.0, %v3421_v59  ;;  %v770_v0 = vsel %vm745_vm1, %v3884_v56, 0.0 }
 0x117   : > { %768 = vadd.xlane.f32.xlu1 %v767_v58  ;;  %771 = vadd.xlane.f32.xlu0 %v770_v0  ;;  %v3890_v3 = vmul.f32 %v722_v61, %v674_v53 }
 0x118   : > { %v3423_v2 = vpop.eup %3422  ;;  %v3892_v4 = vmul.f32 %v721_v63, %v673_v57 }
 0x119   : > { %v3425_v7 = vpop.eup %3424  ;;  %v724_v8 = vadd.f32 1.0, %v3423_v2  ;;  %v779_v18 = vsel %vm745_vm1, %v3890_v3, 0.0 }
 0x11a   : > { %v723_v9 = vadd.f32 1.0, %v3425_v7  ;;  %v776_v10 = vsel %vm745_vm1, %v3892_v4, 0.0 }
 0x11b   : > { %774 = vadd.xlane.f32.xlu1 %v773_v6  ;;  %777 = vadd.xlane.f32.xlu0 %v776_v10  ;;  %v3898_v15 = vmul.f32 %v724_v8, %v676_v1 }
 0x11c   : > { %v3427_v13 = vpop.eup %3426  ;;  %v3900_v16 = vmul.f32 %v723_v9, %v675_v5 }
 0x11d   : > { %v3429_v19 = vpop.eup %3428  ;;  %v726_v20 = vadd.f32 1.0, %v3427_v13  ;;  %v785_v26 = vsel %vm745_vm1, %v3898_v15, 0.0 }
 0x11e   : > { %v725_v21 = vadd.f32 1.0, %v3429_v19  ;;  %v782_v22 = vsel %vm745_vm1, %v3900_v16, 0.0 }
 0x11f   : > { %780 = vadd.xlane.f32.xlu1 %v779_v18  ;;  %783 = vadd.xlane.f32.xlu0 %v782_v22  ;;  %v3906_v24 = vmul.f32 %v726_v20, %v678_v11 }
 0x120   : > { %v3908_v25 = vmul.f32 %v725_v21, %v677_v17 }
 0x121   : > { %v791_v29 = vsel %vm745_vm1, %v3906_v24, 0.0 }
 0x122   : > { %v788_v28 = vsel %vm745_vm1, %v3908_v25, 0.0 }
 0x123   : > { %786 = vadd.xlane.f32.xlu1 %v785_v26  ;;  %789 = vadd.xlane.f32.xlu0 %v788_v28 }
 0x127   : > { %792 = vadd.xlane.f32.xlu1 %v791_v29 }
 0x194   : > { %v748_v30 = vpop.xlane.xlu0 %747 }
 0x195   : > { %v795_v31 = vmul.f32 0.015625, %v748_v30 }
 0x197   : > { %v3917_v33 = vsub.f32 %v3844_v60, %v795_v31 }
 0x198   : > { %v754_v34 = vpop.xlane.xlu1 %753  ;;  %v751_v35 = vpop.xlane.xlu0 %750 }
 0x199   : > { %v797_v36 = vmul.f32 0.015625, %v754_v34  ;;  %v796_v37 = vmul.f32 0.015625, %v751_v35  ;;  %v827_v38 = vmul.f32 %v3917_v33, %v3917_v33 }
 0x19b   : > { %v3922_v39 = vsub.f32 %v3853_v12, %v797_v36  ;;  %v3925_v40 = vsub.f32 %v3846_v62, %v796_v37  ;;  %v843_v41 = vsel %vm745_vm1, %v827_v38, 0.0 }
 0x19c   : > { %v757_v42 = vpop.xlane.xlu1 %756  ;;  %844 = vadd.xlane.f32.xlu0 %v843_v41  ;;  %v760_v43 = vpop.xlane.xlu0 %759 }
 0x19d   : > { %v798_v46 = vmul.f32 0.015625, %v757_v42  ;;  %v799_v47 = vmul.f32 0.015625, %v760_v43  ;;  %v829_v48 = vmul.f32 %v3922_v39, %v3922_v39  ;;  %v828_v49 = vmul.f32 %v3925_v40, %v3925_v40 }
 0x19f   : > { %v3933_v50 = vsub.f32 %v3855_v14, %v798_v46  ;;  %v3936_v51 = vsub.f32 %v3863_v27, %v799_v47  ;;  %v849_v52 = vsel %vm745_vm1, %v829_v48, 0.0  ;;  %v846_v23 = vsel %vm745_vm1, %v828_v49, 0.0 }
 0x1a0   : > { %v763_v53 = vpop.xlane.xlu1 %762  ;;  %850 = vadd.xlane.f32.xlu0 %v849_v52  ;;  %847 = vadd.xlane.f32.xlu1 %v846_v23  ;;  %v766_v54 = vpop.xlane.xlu0 %765 }
 0x1a1   : > { %v800_v57 = vmul.f32 0.015625, %v763_v53  ;;  %v801_v58 = vmul.f32 0.015625, %v766_v54  ;;  %v830_v59 = vmul.f32 %v3933_v50, %v3933_v50  ;;  %v831_v61 = vmul.f32 %v3936_v51, %v3936_v51 }
 0x1a3   : > { %v3945_v63 = vsub.f32 %v3865_v32, %v800_v57  ;;  %v3948_v0 = vsub.f32 %v3875_v45, %v801_v58  ;;  %v852_v1 = vsel %vm745_vm1, %v830_v59, 0.0  ;;  %v855_v2 = vsel %vm745_vm1, %v831_v61, 0.0  ;;  %v999_v58 = vld [vmem:[%s4996_s5] sm:$0xff]  ;;  %v1000_v59 = vld [vmem:[%s4996_s5 + $0x8] sm:$0xff] }
 0x1a4   : > { %v769_v5 = vpop.xlane.xlu1 %768  ;;  %853 = vadd.xlane.f32.xlu1 %v852_v1  ;;  %856 = vadd.xlane.f32.xlu0 %v855_v2  ;;  %v772_v6 = vpop.xlane.xlu0 %771  ;;  %v3244_v61 = vpack.c.bf16 %v1000_v59, %v999_v58 }
 0x1a5   : > { %v802_v7 = vmul.f32 0.015625, %v769_v5  ;;  %v803_v8 = vmul.f32 0.015625, %v772_v6  ;;  %v832_v9 = vmul.f32 %v3945_v63, %v3945_v63  ;;  %v833_v10 = vmul.f32 %v3948_v0, %v3948_v0 }
 0x1a6   : > { %3245 = vmatprep.subr.bf16.mxu1 %v3244_v61 }
 0x1a7   : > { %v3957_v11 = vsub.f32 %v3873_v44, %v802_v7  ;;  %v3960_v13 = vsub.f32 %v3884_v56, %v803_v8  ;;  %v858_v17 = vsel %vm745_vm1, %v832_v9, 0.0  ;;  %v861_v18 = vsel %vm745_vm1, %v833_v10, 0.0  ;;  %3247 = vmatpush3.bf16.msra.mxu1 %v3244_v61 }
 0x1a8   : > { %v775_v19 = vpop.xlane.xlu1 %774  ;;  %859 = vadd.xlane.f32.xlu1 %v858_v17  ;;  %862 = vadd.xlane.f32.xlu0 %v861_v18  ;;  %v778_v20 = vpop.xlane.xlu0 %777  ;;  %v1001_v17 = vld [vmem:[%s4996_s5 + $0x10] sm:$0xff]  ;;  %v1002_v18 = vld [vmem:[%s4996_s5 + $0x18] sm:$0xff] }
 0x1a9   : > { %v804_v21 = vmul.f32 0.015625, %v775_v19  ;;  %v805_v22 = vmul.f32 0.015625, %v778_v20  ;;  %v834_v26 = vmul.f32 %v3957_v11, %v3957_v11  ;;  %v835_v28 = vmul.f32 %v3960_v13, %v3960_v13 }
 0x1aa   : > { %v3248_v19 = vpack.c.bf16 %v1002_v18, %v1001_v17 }
 0x1ab   : > { %v3969_v29 = vsub.f32 %v3882_v55, %v804_v21  ;;  %v3972_v30 = vsub.f32 %v3892_v4, %v805_v22  ;;  %v864_v31 = vsel %vm745_vm1, %v834_v26, 0.0  ;;  %v867_v34 = vsel %vm745_vm1, %v835_v28, 0.0  ;;  %v1003_v28 = vld [vmem:[%s4996_s5 + $0x20] sm:$0xff] }
 0x1ac   : > { %v781_v35 = vpop.xlane.xlu1 %780  ;;  %865 = vadd.xlane.f32.xlu1 %v864_v31  ;;  %868 = vadd.xlane.f32.xlu0 %v867_v34  ;;  %v784_v36 = vpop.xlane.xlu0 %783  ;;  %v1004_v31 = vld [vmem:[%s4996_s5 + $0x28] sm:$0xff] }
 0x1ad   : > { %v806_v37 = vmul.f32 0.015625, %v781_v35  ;;  %v807_v38 = vmul.f32 0.015625, %v784_v36  ;;  %v836_v41 = vmul.f32 %v3969_v29, %v3969_v29  ;;  %v837_v42 = vmul.f32 %v3972_v30, %v3972_v30  ;;  %3249 = vmatprep.subr.bf16.mxu1 %v3248_v19  ;;  %v1005_v36 = vld [vmem:[%s4996_s5 + $0x30] sm:$0xff] }
 0x1ae   : > { %3251 = vmatpush3.bf16.msra.mxu1 %v3248_v19  ;;  %v3252_v34 = vpack.c.bf16 %v1004_v31, %v1003_v28 }
 0x1af   : > { %v3981_v43 = vsub.f32 %v3890_v3, %v806_v37  ;;  %v3984_v46 = vsub.f32 %v3900_v16, %v807_v38  ;;  %v870_v47 = vsel %vm745_vm1, %v836_v41, 0.0  ;;  %v873_v48 = vsel %vm745_vm1, %v837_v42, 0.0  ;;  %v1006_v37 = vld [vmem:[%s4996_s5 + $0x38] sm:$0xff]  ;;  %v1287_v41 = vld [vmem:[%s4998_s7] sm:$0xff]  ;;  %v1288_v42 = vld [vmem:[%s4998_s7 + $0x8] sm:$0xff] }
 0x1b0   : > { %v787_v49 = vpop.xlane.xlu1 %786  ;;  %871 = vadd.xlane.f32.xlu1 %v870_v47  ;;  %874 = vadd.xlane.f32.xlu0 %v873_v48  ;;  %v790_v52 = vpop.xlane.xlu0 %789  ;;  %v3256_v38 = vpack.c.bf16 %v1006_v37, %v1005_v36  ;;  %v1289_v47 = vld [vmem:[%s4998_s7 + $0x10] sm:$0xff]  ;;  %v3260_v48 = vpack.c.bf16 %v1288_v42, %v1287_v41 }
 0x1b1   : > { %v808_v23 = vmul.f32 0.015625, %v787_v49  ;;  %v809_v53 = vmul.f32 0.015625, %v790_v52  ;;  %v838_v54 = vmul.f32 %v3981_v43, %v3981_v43  ;;  %v839_v57 = vmul.f32 %v3984_v46, %v3984_v46  ;;  %3253 = vmatprep.subr.bf16.mxu1 %v3252_v34  ;;  %v1290_v49 = vld [vmem:[%s4998_s7 + $0x18] sm:$0xff] }
 0x1b2   : > { %3255 = vmatpush3.bf16.msra.mxu1 %v3252_v34  ;;  %v3264_v52 = vpack.c.bf16 %v1290_v49, %v1289_v47  ;;  %3261 = vmatprep.subr.bf16.mxu0 %v3260_v48 }
 0x1b3   : > { %v3999_v1 = vsub.f32 %v3898_v15, %v808_v23  ;;  %v4002_v2 = vsub.f32 %v3908_v25, %v809_v53  ;;  %v876_v5 = vsel %vm745_vm1, %v838_v54, 0.0  ;;  %v879_v6 = vsel %vm745_vm1, %v839_v57, 0.0  ;;  %3257 = vmatprep.subr.bf16.mxu1 %v3256_v38  ;;  %v1291_v23 = vld [vmem:[%s4998_s7 + $0x20] sm:$0xff]  ;;  %v1292_v53 = vld [vmem:[%s4998_s7 + $0x28] sm:$0xff]  ;;  %3263 = vmatpush3.bf16.msra.mxu0 %v3260_v48 }
 0x1b4   : > { %v793_v7 = vpop.xlane.xlu1 %792  ;;  %877 = vadd.xlane.f32.xlu1 %v876_v5  ;;  %880 = vadd.xlane.f32.xlu0 %v879_v6  ;;  %v3268_v54 = vpack.c.bf16 %v1292_v53, %v1291_v23 }
 0x1b5   : > { %v810_v8 = vmul.f32 0.015625, %v793_v7  ;;  %v840_v9 = vmul.f32 %v3999_v1, %v3999_v1  ;;  %v841_v10 = vmul.f32 %v4002_v2, %v4002_v2  ;;  %3265 = vmatprep.subr.bf16.mxu0 %v3264_v52 }
 0x1b6   : > { %3259 = vmatpush3.bf16.msra.mxu1 %v3256_v38  ;;  %v4057_v38 = vld [vmem:[%s4994_s3] ss:$0 sm:$0xff] }
 0x1b7   : > { %v4017_v20 = vsub.f32 %v3906_v24, %v810_v8  ;;  %v882_v21 = vsel %vm745_vm1, %v840_v9, 0.0  ;;  %v885_v22 = vsel %vm745_vm1, %v841_v10, 0.0  ;;  %3267 = vmatpush3.bf16.msra.mxu0 %v3264_v52  ;;  %v4063_v52 = vld [vmem:[%s4995_s4] ss:$0 sm:$0xff] }
 0x1b8   : > { %883 = vadd.xlane.f32.xlu1 %v882_v21  ;;  %886 = vadd.xlane.f32.xlu0 %v885_v22 }
 0x1b9   : > { %v842_v26 = vmul.f32 %v4017_v20, %v4017_v20  ;;  %3269 = vmatprep.subr.bf16.mxu0 %v3268_v54 }
 0x1bb   : > { %v888_v35 = vsel %vm745_vm1, %v842_v26, 0.0  ;;  %3271 = vmatpush3.bf16.msra.mxu0 %v3268_v54 }
 0x1bc   : > { %889 = vadd.xlane.f32.xlu1 %v888_v35 }
 0x229   : > { %v845_v57 = vpop.xlane.xlu0 %844 }
 0x22a   : > { %v891_v58 = vmul.f32 0.015625, %v845_v57 }
 0x22c   : > { %v907_v59 = vadd.f32 1e-05, %v891_v58 }
 0x22d   : > { %v848_v61 = vpop.xlane.xlu1 %847  ;;  %v851_v5 = vpop.xlane.xlu0 %850 }
 0x22e   : > { %3430 = vrsqrt.f32 %v907_v59  ;;  %v892_v6 = vmul.f32 0.015625, %v848_v61  ;;  %v893_v7 = vmul.f32 0.015625, %v851_v5 }
 0x230   : > { %v908_v8 = vadd.f32 1e-05, %v892_v6  ;;  %v909_v9 = vadd.f32 1e-05, %v893_v7 }
 0x231   : > { %v854_v10 = vpop.xlane.xlu1 %853  ;;  %v857_v17 = vpop.xlane.xlu0 %856 }
 0x232   : > { %3432 = vrsqrt.f32 %v908_v8  ;;  %v894_v18 = vmul.f32 0.015625, %v854_v10  ;;  %v895_v19 = vmul.f32 0.015625, %v857_v17 }
 0x233   : > { %3434 = vrsqrt.f32 %v909_v9 }
 0x234   : > { %v910_v21 = vadd.f32 1e-05, %v894_v18  ;;  %v911_v22 = vadd.f32 1e-05, %v895_v19 }
 0x235   : > { %v860_v26 = vpop.xlane.xlu1 %859  ;;  %v863_v28 = vpop.xlane.xlu0 %862 }
 0x236   : > { %3436 = vrsqrt.f32 %v910_v21  ;;  %v896_v31 = vmul.f32 0.015625, %v860_v26  ;;  %v897_v34 = vmul.f32 0.015625, %v863_v28 }
 0x237   : > { %3438 = vrsqrt.f32 %v911_v22 }
 0x238   : > { %v3431_v35 = vpop.eup %3430  ;;  %v912_v36 = vadd.f32 1e-05, %v896_v31  ;;  %v913_v37 = vadd.f32 1e-05, %v897_v34 }
 0x239   : > { %v866_v41 = vpop.xlane.xlu1 %865  ;;  %v869_v42 = vpop.xlane.xlu0 %868  ;;  %v939_v47 = vmul.f32 %v3431_v35, %v3917_v33 }
 0x23a   : > { %3440 = vrsqrt.f32 %v912_v36  ;;  %v898_v48 = vmul.f32 0.015625, %v866_v41  ;;  %v899_v49 = vmul.f32 0.015625, %v869_v42 }
 0x23b   : > { %3442 = vrsqrt.f32 %v913_v37  ;;  %v961_v23 = vmul.f32 %v4057_v38, %v939_v47 }
 0x23c   : > { %v3433_v53 = vpop.eup %3432  ;;  %v914_v54 = vadd.f32 1e-05, %v898_v48  ;;  %v915_v57 = vadd.f32 1e-05, %v899_v49 }
 0x23d   : > { %v3435_v58 = vpop.eup %3434  ;;  %v872_v59 = vpop.xlane.xlu1 %871  ;;  %v983_v5 = vadd.f32 %v4063_v52, %v961_v23  ;;  %v940_v33 = vmul.f32 %v3433_v53, %v3925_v40 }
 0x23e   : > { %v875_v61 = vpop.xlane.xlu0 %874  ;;  %3444 = vrsqrt.f32 %v914_v54  ;;  %v900_v6 = vmul.f32 0.015625, %v872_v59  ;;  %v941_v8 = vmul.f32 %v3435_v58, %v3922_v39 }
 0x23f   : > { %v901_v7 = vmul.f32 0.015625, %v875_v61  ;;  %3446 = vrsqrt.f32 %v915_v57  ;;  %3060 = vmatprep.mubr.msk.f32.mxu1 %vm745_vm1, %v983_v5  ;;  %v962_v9 = vmul.f32 %v4057_v38, %v940_v33 }
 0x240   : > { %v3437_v10 = vpop.eup %3436  ;;  %v916_v17 = vadd.f32 1e-05, %v900_v6  ;;  %v963_v19 = vmul.f32 %v4057_v38, %v941_v8 }
 0x241   : > { %v917_v18 = vadd.f32 1e-05, %v901_v7  ;;  %v3439_v21 = vpop.eup %3438  ;;  %v878_v22 = vpop.xlane.xlu1 %877  ;;  %v984_v40 = vadd.f32 %v4063_v52, %v962_v9  ;;  %v942_v28 = vmul.f32 %v3437_v10, %v3933_v50 }
 0x242   : > { %v881_v26 = vpop.xlane.xlu0 %880  ;;  %3448 = vrsqrt.f32 %v916_v17  ;;  %v902_v31 = vmul.f32 0.015625, %v878_v22  ;;  %v985_v34 = vadd.f32 %v4063_v52, %v963_v19  ;;  %v943_v36 = vmul.f32 %v3439_v21, %v3936_v51 }
 0x243   : > { %v903_v39 = vmul.f32 0.015625, %v881_v26  ;;  %3450 = vrsqrt.f32 %v917_v18  ;;  %3061 = vmatmul.mubr.msk.f32.vlgmr.msra.gmra.mrb[0].mxu1 %vm745_vm1, %v984_v40  ;;  %v964_v35 = vmul.f32 %v4057_v38, %v942_v28 }
 0x244   : > { %v3441_v37 = vpop.eup %3440  ;;  %v918_v41 = vadd.f32 1e-05, %v902_v31  ;;  %3063 = vmatprep.mubr.msk.f32.mxu1 %vm745_vm1, %v985_v34  ;;  %v965_v23 = vmul.f32 %v4057_v38, %v943_v36 }
 0x245   : > { %v919_v42 = vadd.f32 1e-05, %v903_v39  ;;  %v3443_v47 = vpop.eup %3442  ;;  %v884_v48 = vpop.xlane.xlu1 %883  ;;  %v986_v49 = vadd.f32 %v4063_v52, %v964_v35  ;;  %v944_v53 = vmul.f32 %v3441_v37, %v3945_v63 }
 0x246   : > { %v887_v50 = vpop.xlane.xlu0 %886  ;;  %3452 = vrsqrt.f32 %v918_v41  ;;  %v904_v54 = vmul.f32 0.015625, %v884_v48  ;;  %v945_v58 = vmul.f32 %v3443_v47, %v3948_v0  ;;  %v987_v51 = vadd.f32 %v4063_v52, %v965_v23 }
 0x247   : > { %v905_v57 = vmul.f32 0.015625, %v887_v50  ;;  %3454 = vrsqrt.f32 %v919_v42  ;;  %3064 = vmatmul.mubr.msk.f32.gmra.mrb[2].mxu1 %vm745_vm1, %v986_v49  ;;  %v966_v59 = vmul.f32 %v4057_v38, %v944_v53 }
 0x248   : > { %v3445_v61 = vpop.eup %3444  ;;  %v920_v5 = vadd.f32 1e-05, %v904_v54  ;;  %v967_v6 = vmul.f32 %v4057_v38, %v945_v58  ;;  %3066 = vmatprep.mubr.msk.f32.mxu1 %vm745_vm1, %v987_v51 }
 0x249   : > { %v921_v33 = vadd.f32 1e-05, %v905_v57  ;;  %v3447_v7 = vpop.eup %3446  ;;  %v890_v63 = vpop.xlane.xlu1 %889  ;;  %v988_v8 = vadd.f32 %v4063_v52, %v966_v59  ;;  %v946_v0 = vmul.f32 %v3445_v61, %v3957_v11  ;;  %v1293_v59 = vld [vmem:[%s4998_s7 + $0x30] sm:$0xff] }
 0x24a   : > { %3456 = vrsqrt.f32 %v920_v5  ;;  %v906_v9 = vmul.f32 0.015625, %v890_v63  ;;  %v989_v10 = vadd.f32 %v4063_v52, %v967_v6  ;;  %v947_v17 = vmul.f32 %v3447_v7, %v3960_v13  ;;  %v1298_v6 = vld [vmem:[%s4998_s7 + $0x58] sm:$0xff]  ;;  %v1299_v63 = vld [vmem:[%s4998_s7 + $0x60] sm:$0xff] }
 0x24b   : > { %3458 = vrsqrt.f32 %v921_v33  ;;  %3067 = vmatmul.mubr.msk.f32.gmra.mrb[4].mxu1 %vm745_vm1, %v988_v8  ;;  %v968_v18 = vmul.f32 %v4057_v38, %v946_v0  ;;  %v1297_v33 = vld [vmem:[%s4998_s7 + $0x50] sm:$0xff]  ;;  %v1300_v8 = vld [vmem:[%s4998_s7 + $0x68] sm:$0xff] }
 0x24c   : > { %v3449_v19 = vpop.eup %3448  ;;  %v922_v21 = vadd.f32 1e-05, %v906_v9  ;;  %3069 = vmatprep.mubr.msk.f32.mxu1 %vm745_vm1, %v989_v10  ;;  %v969_v22 = vmul.f32 %v4057_v38, %v947_v17  ;;  %v3280_v7 = vpack.c.bf16 %v1298_v6, %v1297_v33  ;;  %v3284_v0 = vpack.c.bf16 %v1300_v8, %v1299_v63  ;;  %v1301_v9 = vld [vmem:[%s4998_s7 + $0x70] sm:$0xff]  ;;  %v1302_v10 = vld [vmem:[%s4998_s7 + $0x78] sm:$0xff] }
 0x24d   : > { %v3451_v26 = vpop.eup %3450  ;;  %v990_v11 = vadd.f32 %v4063_v52, %v968_v18  ;;  %v948_v40 = vmul.f32 %v3449_v19, %v3969_v29  ;;  %v3288_v17 = vpack.c.bf16 %v1302_v10, %v1301_v9  ;;  %v4161_v18 = vld [vmem:[%s4997_s6] ss:$0 sm:$0xff] }
 0x24e   : > { %3460 = vrsqrt.f32 %v922_v21  ;;  %v991_v28 = vadd.f32 %v4063_v52, %v969_v22  ;;  %v949_v13 = vmul.f32 %v3451_v26, %v3972_v30 }
 0x24f   : > { %3070 = vmatmul.mubr.msk.f32.gmra.mrb[6].mxu1 %vm745_vm1, %v990_v11  ;;  %v970_v31 = vmul.f32 %v4057_v38, %v948_v40 }
 0x250   : > { %v3453_v39 = vpop.eup %3452  ;;  %3072 = vmatprep.mubr.msk.f32.mxu1 %vm745_vm1, %v991_v28  ;;  %v971_v34 = vmul.f32 %v4057_v38, %v949_v13 }
 0x251   : > { %v3455_v35 = vpop.eup %3454  ;;  %v992_v36 = vadd.f32 %v4063_v52, %v970_v31  ;;  %v950_v37 = vmul.f32 %v3453_v39, %v3981_v43 }
 0x252   : > { %v993_v29 = vadd.f32 %v4063_v52, %v971_v34  ;;  %v951_v41 = vmul.f32 %v3455_v35, %v3984_v46 }
 0x253   : > { %3073 = vmatmul.mubr.msk.f32.gmra.mrb[8].mxu1 %vm745_vm1, %v992_v36  ;;  %v972_v30 = vmul.f32 %v4057_v38, %v950_v37 }
 0x254   : > { %v3457_v42 = vpop.eup %3456  ;;  %3075 = vmatprep.mubr.msk.f32.mxu1 %vm745_vm1, %v993_v29  ;;  %v973_v47 = vmul.f32 %v4057_v38, %v951_v41 }
 0x255   : > { %v3459_v48 = vpop.eup %3458  ;;  %v994_v50 = vadd.f32 %v4063_v52, %v972_v30  ;;  %v952_v49 = vmul.f32 %v3457_v42, %v3999_v1 }
 0x256   : > { %v995_v43 = vadd.f32 %v4063_v52, %v973_v47  ;;  %v953_v23 = vmul.f32 %v3459_v48, %v4002_v2 }
 0x257   : > { %3076 = vmatmul.mubr.msk.f32.gmra.mrb[10].mxu1 %vm745_vm1, %v994_v50  ;;  %v974_v46 = vmul.f32 %v4057_v38, %v952_v49 }
 0x258   : > { %v3461_v53 = vpop.eup %3460  ;;  %3078 = vmatprep.mubr.msk.f32.mxu1 %vm745_vm1, %v995_v43  ;;  %v975_v54 = vmul.f32 %v4057_v38, %v953_v23 }
 0x259   : > { %v996_v57 = vadd.f32 %v4063_v52, %v974_v46  ;;  %v954_v58 = vmul.f32 %v3461_v53, %v4017_v20  ;;  %v1294_v20 = vld [vmem:[%s4998_s7 + $0x38] sm:$0xff] }
 0x25a   : > { %v997_v51 = vadd.f32 %v4063_v52, %v975_v54  ;;  %v3272_v61 = vpack.c.bf16 %v1294_v20, %v1293_v59 }
 0x25b   : > { %3079 = vmatmul.mubr.msk.f32.gmra.mrb[12].mxu1 %vm745_vm1, %v996_v57  ;;  %v976_v1 = vmul.f32 %v4057_v38, %v954_v58  ;;  %v1295_v38 = vld [vmem:[%s4998_s7 + $0x40] sm:$0xff] }
 0x25c   : > { %3081 = vmatprep.mubr.msk.f32.mxu1 %vm745_vm1, %v997_v51  ;;  %3273 = vmatprep.subr.bf16.mxu0 %v3272_v61 }
 0x25d   : > { %v998_v2 = vadd.f32 %v4063_v52, %v976_v1  ;;  %3275 = vmatpush3.bf16.msra.mxu0 %v3272_v61  ;;  %v1296_v52 = vld [vmem:[%s4998_s7 + $0x48] sm:$0xff] }
 0x25e   : > { %v3276_v5 = vpack.c.bf16 %v1296_v52, %v1295_v38 }
 0x25f   : > { %3082 = vmatmul.mubr.msk.f32.gmra.mrb[14].mxu1 %vm745_vm1, %v998_v2 }
 0x260   : > { %3277 = vmatprep.subr.bf16.mxu0 %v3276_v5 }
 0x261   : > { %3279 = vmatpush3.bf16.msra.mxu0 %v3276_v5 }
 0x262   : > { %3281 = vmatprep.subr.bf16.mxu0 %v3280_v7 }
 0x265   : > { %3283 = vmatpush3.bf16.msra.mxu0 %v3280_v7 }
 0x266   : > { %3285 = vmatprep.subr.bf16.mxu0 %v3284_v0 }
 0x269   : > { %3287 = vmatpush3.bf16.msra.mxu0 %v3284_v0 }
 0x26a   : > { %3289 = vmatprep.subr.bf16.mxu0 %v3288_v17 }
 0x26d   : > { %3291 = vmatpush3.bf16.msra.mxu0 %v3288_v17 }
 0x316   : > { %v3062_v19 = vpop.f32.mrb[0].mxu1 }
 0x317   : > { %v1134_v21 = vadd.f32 %v3062_v19, %v4161_v18  ;;  %v1128_v22 = vpop.f32.mrb[1].mxu1 }
 0x318   : > { %v1129_v26 = vadd.f32 %v4161_v18, %v1128_v22 }
 0x319   : > { %v1224_v11 = vmul.f32 0.70710677, %v1134_v21  ;;  %v1208_v59 = vmul.f32 0.5, %v1134_v21 }
 0x31a   : > { %v1223_v40 = vmul.f32 0.70710677, %v1129_v26  ;;  %v3065_v28 = vpop.f32.mrb[2].mxu1  ;;  %v1207_v58 = vmul.f32 0.5, %v1129_v26 }
 0x31b   : > { %3462 = verf.f32 %v1224_v11  ;;  %v1144_v13 = vadd.f32 %v3065_v28, %v4161_v18  ;;  %v1138_v31 = vpop.f32.mrb[3].mxu1 }
 0x31c   : > { %3464 = verf.f32 %v1223_v40  ;;  %v1139_v39 = vadd.f32 %v4161_v18, %v1138_v31 }
 0x31d   : > { %v1226_v34 = vmul.f32 0.70710677, %v1144_v13  ;;  %v1210_v17 = vmul.f32 0.5, %v1144_v13 }
 0x31e   : > { %v1225_v35 = vmul.f32 0.70710677, %v1139_v39  ;;  %v3068_v36 = vpop.f32.mrb[4].mxu1  ;;  %v1209_v8 = vmul.f32 0.5, %v1139_v39 }
 0x31f   : > { %3466 = verf.f32 %v1226_v34  ;;  %v1154_v37 = vadd.f32 %v3068_v36, %v4161_v18  ;;  %v1148_v29 = vpop.f32.mrb[5].mxu1 }
 0x320   : > { %3468 = verf.f32 %v1225_v35  ;;  %v1149_v41 = vadd.f32 %v4161_v18, %v1148_v29 }
 0x321   : > { %v1228_v30 = vmul.f32 0.70710677, %v1154_v37  ;;  %v1212_v13 = vmul.f32 0.5, %v1154_v37 }
 0x322   : > { %v1227_v42 = vmul.f32 0.70710677, %v1149_v41  ;;  %v3071_v47 = vpop.f32.mrb[6].mxu1  ;;  %v1211_v34 = vmul.f32 0.5, %v1149_v41 }
 0x323   : > { %3470 = verf.f32 %v1228_v30  ;;  %v4170_v48 = vadd.f32 %v3071_v47, %v4161_v18  ;;  %v1158_v50 = vpop.f32.mrb[7].mxu1 }
 0x324   : > { %3472 = verf.f32 %v1227_v42  ;;  %v1159_v49 = vadd.f32 %v4161_v18, %v1158_v50 }
 0x325   : > { %v3463_v43 = vpop.eup %3462  ;;  %v1230_v23 = vmul.f32 0.70710677, %v4170_v48  ;;  %v1214_v37 = vmul.f32 0.5, %v4170_v48 }
 0x326   : > { %v3465_v46 = vpop.eup %3464  ;;  %v1256_v53 = vadd.f32 1.0, %v3463_v43  ;;  %v1229_v54 = vmul.f32 0.70710677, %v1159_v49  ;;  %v3074_v57 = vpop.f32.mrb[8].mxu1  ;;  %v1213_v41 = vmul.f32 0.5, %v1159_v49 }
 0x327   : > { %v1255_v51 = vadd.f32 1.0, %v3465_v46  ;;  %3474 = verf.f32 %v1230_v23  ;;  %v4175_v1 = vadd.f32 %v3074_v57, %v4161_v18  ;;  %v1168_v2 = vpop.f32.mrb[9].mxu1 }
 0x328   : > { %3476 = verf.f32 %v1229_v54  ;;  %v1169_v20 = vadd.f32 %v4161_v18, %v1168_v2  ;;  %v1272_v33 = vmul.f32 %v1256_v53, %v1208_v59 }
 0x329   : > { %v3467_v61 = vpop.eup %3466  ;;  %v1232_v38 = vmul.f32 0.70710677, %v4175_v1  ;;  %v1271_v52 = vmul.f32 %v1255_v51, %v1207_v58 }
 0x32a   : > { %v3469_v5 = vpop.eup %3468  ;;  %v1258_v6 = vadd.f32 1.0, %v3467_v61  ;;  %v1231_v7 = vmul.f32 0.70710677, %v1169_v20  ;;  %v3077_v63 = vpop.f32.mrb[10].mxu1  ;;  %v1215_v49 = vmul.f32 0.5, %v1169_v20 }
 0x32b   : > { %v1257_v0 = vadd.f32 1.0, %v3469_v5  ;;  %3478 = verf.f32 %v1232_v38  ;;  %v4180_v9 = vadd.f32 %v3077_v63, %v4161_v18  ;;  %v1178_v10 = vpop.f32.mrb[11].mxu1  ;;  %3116 = vmatprep.mubr.f32.mxu0 %v1271_v52  ;;  %v1216_v63 = vmul.f32 0.5, %v4175_v1 }
 0x32c   : > { %3480 = verf.f32 %v1231_v7  ;;  %v1179_v19 = vadd.f32 %v4161_v18, %v1178_v10  ;;  %3117 = vmatmul.mubr.f32.vlgmr.msra.gmra.mrb[16].mxu0 %v1272_v33  ;;  %v1274_v39 = vmul.f32 %v1258_v6, %v1210_v17 }
 0x32d   : > { %v3471_v21 = vpop.eup %3470  ;;  %v1234_v22 = vmul.f32 0.70710677, %v4180_v9  ;;  %v1273_v26 = vmul.f32 %v1257_v0, %v1209_v8 }
 0x32e   : > { %v3473_v11 = vpop.eup %3472  ;;  %v1260_v40 = vadd.f32 1.0, %v3471_v21  ;;  %v1233_v28 = vmul.f32 0.70710677, %v1179_v19  ;;  %v3080_v31 = vpop.f32.mrb[12].mxu1  ;;  %v1217_v17 = vmul.f32 0.5, %v1179_v19 }
 0x32f   : > { %v1259_v35 = vadd.f32 1.0, %v3473_v11  ;;  %3482 = verf.f32 %v1234_v22  ;;  %v1194_v36 = vadd.f32 %v3080_v31, %v4161_v18  ;;  %v1188_v29 = vpop.f32.mrb[13].mxu1  ;;  %3119 = vmatprep.mubr.f32.mxu0 %v1273_v26  ;;  %v1218_v22 = vmul.f32 0.5, %v4180_v9 }
 0x330   : > { %3484 = verf.f32 %v1233_v28  ;;  %v1189_v30 = vadd.f32 %v4161_v18, %v1188_v29  ;;  %3120 = vmatmul.mubr.f32.gmra.mrb[18].mxu0 %v1274_v39  ;;  %v1276_v54 = vmul.f32 %v1260_v40, %v1212_v13 }
 0x331   : > { %v3475_v42 = vpop.eup %3474  ;;  %v1236_v47 = vmul.f32 0.70710677, %v1194_v36  ;;  %v1275_v50 = vmul.f32 %v1259_v35, %v1211_v34  ;;  %v1220_v39 = vmul.f32 0.5, %v1194_v36  ;;  %v4194_v36 = vld [vmem:[%s4999_s8] ss:$0 sm:$0xff] }
 0x332   : > { %v3477_v43 = vpop.eup %3476  ;;  %v1262_v23 = vadd.f32 1.0, %v3475_v42  ;;  %v1235_v46 = vmul.f32 0.70710677, %v1189_v30  ;;  %v3083_v53 = vpop.f32.mrb[14].mxu1  ;;  %v1219_v31 = vmul.f32 0.5, %v1189_v30 }
 0x333   : > { %v1261_v57 = vadd.f32 1.0, %v3477_v43  ;;  %3486 = verf.f32 %v1236_v47  ;;  %v1204_v58 = vadd.f32 %v3083_v53, %v4161_v18  ;;  %v1198_v51 = vpop.f32.mrb[15].mxu1  ;;  %3122 = vmatprep.mubr.f32.mxu0 %v1275_v50 }
 0x334   : > { %3488 = verf.f32 %v1235_v46  ;;  %v1199_v2 = vadd.f32 %v4161_v18, %v1198_v51  ;;  %3123 = vmatmul.mubr.f32.gmra.mrb[20].mxu0 %v1276_v54  ;;  %v1278_v6 = vmul.f32 %v1262_v23, %v1214_v37 }
 0x335   : > { %v3479_v59 = vpop.eup %3478  ;;  %v1238_v61 = vmul.f32 0.70710677, %v1204_v58  ;;  %v1277_v38 = vmul.f32 %v1261_v57, %v1213_v41  ;;  %v1222_v9 = vmul.f32 0.5, %v1204_v58 }
 0x336   : > { %v3481_v52 = vpop.eup %3480  ;;  %v1264_v5 = vadd.f32 1.0, %v3479_v59  ;;  %v1237_v33 = vmul.f32 0.70710677, %v1199_v2  ;;  %v1221_v42 = vmul.f32 0.5, %v1199_v2 }
 0x337   : > { %v1263_v7 = vadd.f32 1.0, %v3481_v52  ;;  %3490 = verf.f32 %v1238_v61  ;;  %3125 = vmatprep.mubr.f32.mxu0 %v1277_v38 }
 0x338   : > { %3492 = verf.f32 %v1237_v33  ;;  %3126 = vmatmul.mubr.f32.gmra.mrb[22].mxu0 %v1278_v6  ;;  %v1280_v10 = vmul.f32 %v1264_v5, %v1216_v63 }
 0x339   : > { %v3483_v48 = vpop.eup %3482  ;;  %v1279_v8 = vmul.f32 %v1263_v7, %v1215_v49 }
 0x33a   : > { %v3485_v0 = vpop.eup %3484  ;;  %v1266_v18 = vadd.f32 1.0, %v3483_v48 }
 0x33b   : > { %v1265_v21 = vadd.f32 1.0, %v3485_v0  ;;  %3128 = vmatprep.mubr.f32.mxu0 %v1279_v8 }
 0x33c   : > { %3129 = vmatmul.mubr.f32.gmra.mrb[24].mxu0 %v1280_v10  ;;  %v1282_v28 = vmul.f32 %v1266_v18, %v1218_v22 }
 0x33d   : > { %v3487_v26 = vpop.eup %3486  ;;  %v1281_v20 = vmul.f32 %v1265_v21, %v1217_v17 }
 0x33e   : > { %v3489_v11 = vpop.eup %3488  ;;  %v1268_v40 = vadd.f32 1.0, %v3487_v26 }
 0x33f   : > { %v1267_v1 = vadd.f32 1.0, %v3489_v11  ;;  %3131 = vmatprep.mubr.f32.mxu0 %v1281_v20 }
 0x340   : > { %3132 = vmatmul.mubr.f32.gmra.mrb[26].mxu0 %v1282_v28  ;;  %v1284_v19 = vmul.f32 %v1268_v40, %v1220_v39 }
 0x341   : > { %v3491_v34 = vpop.eup %3490  ;;  %v1283_v35 = vmul.f32 %v1267_v1, %v1219_v31 }
 0x342   : > { %v3493_v29 = vpop.eup %3492  ;;  %v1270_v13 = vadd.f32 1.0, %v3491_v34 }
 0x343   : > { %v1269_v47 = vadd.f32 1.0, %v3493_v29  ;;  %3134 = vmatprep.mubr.f32.mxu0 %v1283_v35 }
 0x344   : > { %3135 = vmatmul.mubr.f32.gmra.mrb[28].mxu0 %v1284_v19  ;;  %v1286_v43 = vmul.f32 %v1270_v13, %v1222_v9 }
 0x345   : > { %v1285_v50 = vmul.f32 %v1269_v47, %v1221_v42 }
 0x347   : > { %3137 = vmatprep.mubr.f32.mxu0 %v1285_v50 }
 0x348   : > { %3138 = vmatmul.mubr.f32.gmra.mrb[30].mxu0 %v1286_v43 }
 0x3ff   : > { %v3118_v23 = vpop.f32.mrb[16].mxu0 }
 0x400   : > { %v1449_v30 = vadd.f32 %v3118_v23, %v3846_v62  ;;  %v1369_v46 = vpop.f32.mrb[17].mxu0 }
 0x401   : > { %v1448_v53 = vadd.f32 %v1369_v46, %v3844_v60  ;;  %v2831_v46 = vld [vmem:[%s4996_s5 + $0x48] sm:$0xff] }
 0x402   : > { %v4199_v54 = vadd.f32 %v4194_v36, %v1449_v30 }
 0x403   : > { %v4202_v41 = vadd.f32 %v4194_v36, %v1448_v53  ;;  %v3121_v57 = vpop.f32.mrb[18].mxu0 }
 0x404   : > { %v1451_v58 = vadd.f32 %v3121_v57, %v3855_v14  ;;  %v1379_v51 = vpop.f32.mrb[19].mxu0  ;;  %v1494_v37 = vsel %vm745_vm1, %v4199_v54, 0.0  ;;  %v2833_v57 = vld [vmem:[%s4996_s5 + $0x58] sm:$0xff] }
 0x405   : > { %v1450_v2 = vadd.f32 %v1379_v51, %v3853_v12  ;;  %1495 = vadd.xlane.f32.xlu1 %v1494_v37  ;;  %v1491_v62 = vsel %vm745_vm1, %v4202_v41, 0.0 }
 0x406   : > { %v4211_v60 = vadd.f32 %v4194_v36, %v1451_v58  ;;  %1492 = vadd.xlane.f32.xlu0 %v1491_v62 }
 0x407   : > { %v4214_v59 = vadd.f32 %v4194_v36, %v1450_v2  ;;  %v3124_v61 = vpop.f32.mrb[20].mxu0 }
 0x408   : > { %v1453_v14 = vadd.f32 %v3124_v61, %v3865_v32  ;;  %v1389_v38 = vpop.f32.mrb[21].mxu0  ;;  %v1500_v52 = vsel %vm745_vm1, %v4211_v60, 0.0 }
 0x409   : > { %v1452_v12 = vadd.f32 %v1389_v38, %v3863_v27  ;;  %1501 = vadd.xlane.f32.xlu1 %v1500_v52  ;;  %v1497_v5 = vsel %vm745_vm1, %v4214_v59, 0.0 }
 0x40a   : > { %v4223_v33 = vadd.f32 %v4194_v36, %v1453_v14  ;;  %1498 = vadd.xlane.f32.xlu0 %v1497_v5 }
 0x40b   : > { %v4226_v6 = vadd.f32 %v4194_v36, %v1452_v12  ;;  %v3127_v49 = vpop.f32.mrb[22].mxu0 }
 0x40c   : > { %v1455_v32 = vadd.f32 %v3127_v49, %v3873_v44  ;;  %v1399_v7 = vpop.f32.mrb[23].mxu0  ;;  %v1506_v63 = vsel %vm745_vm1, %v4223_v33, 0.0 }
 0x40d   : > { %v1454_v27 = vadd.f32 %v1399_v7, %v3875_v45  ;;  %1507 = vadd.xlane.f32.xlu1 %v1506_v63  ;;  %v1503_v48 = vsel %vm745_vm1, %v4226_v6, 0.0 }
 0x40e   : > { %v4235_v8 = vadd.f32 %v4194_v36, %v1455_v32  ;;  %1504 = vadd.xlane.f32.xlu0 %v1503_v48 }
 0x40f   : > { %v4238_v0 = vadd.f32 %v4194_v36, %v1454_v27  ;;  %v3130_v18 = vpop.f32.mrb[24].mxu0 }
 0x410   : > { %v1457_v44 = vadd.f32 %v3130_v18, %v3882_v55  ;;  %v1409_v10 = vpop.f32.mrb[25].mxu0  ;;  %v1512_v17 = vsel %vm745_vm1, %v4235_v8, 0.0 }
 0x411   : > { %v1456_v45 = vadd.f32 %v1409_v10, %v3884_v56  ;;  %1513 = vadd.xlane.f32.xlu1 %v1512_v17  ;;  %v1509_v21 = vsel %vm745_vm1, %v4238_v0, 0.0 }
 0x412   : > { %v4247_v22 = vadd.f32 %v4194_v36, %v1457_v44  ;;  %1510 = vadd.xlane.f32.xlu0 %v1509_v21 }
 0x413   : > { %v4250_v26 = vadd.f32 %v4194_v36, %v1456_v45  ;;  %v3133_v20 = vpop.f32.mrb[26].mxu0 }
 0x414   : > { %v1459_v55 = vadd.f32 %v3133_v20, %v3890_v3  ;;  %v1419_v11 = vpop.f32.mrb[27].mxu0  ;;  %v1518_v40 = vsel %vm745_vm1, %v4247_v22, 0.0 }
 0x415   : > { %v1458_v56 = vadd.f32 %v1419_v11, %v3892_v4  ;;  %1519 = vadd.xlane.f32.xlu1 %v1518_v40  ;;  %v1515_v28 = vsel %vm745_vm1, %v4250_v26, 0.0 }
 0x416   : > { %v4259_v31 = vadd.f32 %v4194_v36, %v1459_v55  ;;  %1516 = vadd.xlane.f32.xlu0 %v1515_v28 }
 0x417   : > { %v4262_v1 = vadd.f32 %v4194_v36, %v1458_v56  ;;  %v3136_v39 = vpop.f32.mrb[28].mxu0 }
 0x418   : > { %v1461_v3 = vadd.f32 %v3136_v39, %v3898_v15  ;;  %v1429_v34 = vpop.f32.mrb[29].mxu0  ;;  %v1524_v35 = vsel %vm745_vm1, %v4259_v31, 0.0 }
 0x419   : > { %v1460_v4 = vadd.f32 %v1429_v34, %v3900_v16  ;;  %1525 = vadd.xlane.f32.xlu1 %v1524_v35  ;;  %v1521_v29 = vsel %vm745_vm1, %v4262_v1, 0.0 }
 0x41a   : > { %v4271_v13 = vadd.f32 %v4194_v36, %v1461_v3  ;;  %1522 = vadd.xlane.f32.xlu0 %v1521_v29 }
 0x41b   : > { %v4274_v19 = vadd.f32 %v4194_v36, %v1460_v4  ;;  %v3139_v42 = vpop.f32.mrb[30].mxu0 }
 0x41c   : > { %v1463_v15 = vadd.f32 %v3139_v42, %v3906_v24  ;;  %v1439_v47 = vpop.f32.mrb[31].mxu0  ;;  %v1530_v9 = vsel %vm745_vm1, %v4271_v13, 0.0 }
 0x41d   : > { %v1462_v16 = vadd.f32 %v1439_v47, %v3908_v25  ;;  %1531 = vadd.xlane.f32.xlu1 %v1530_v9  ;;  %v1527_v50 = vsel %vm745_vm1, %v4274_v19, 0.0  ;;  %v2830_v25 = vld [vmem:[%s4996_s5 + $0x40] sm:$0xff] }
 0x41e   : > { %v4283_v43 = vadd.f32 %v4194_v36, %v1463_v15  ;;  %1528 = vadd.xlane.f32.xlu0 %v1527_v50  ;;  %v3292_v53 = vpack.c.bf16 %v2831_v46, %v2830_v25 }
 0x41f   : > { %v4286_v23 = vadd.f32 %v4194_v36, %v1462_v16  ;;  %v2832_v36 = vld [vmem:[%s4996_s5 + $0x50] sm:$0xff] }
 0x420   : > { %v1536_v24 = vsel %vm745_vm1, %v4283_v43, 0.0  ;;  %v3296_v58 = vpack.c.bf16 %v2833_v57, %v2832_v36  ;;  %3293 = vmatprep.subr.bf16.mxu1 %v3292_v53 }
 0x421   : > { %1537 = vadd.xlane.f32.xlu1 %v1536_v24  ;;  %v1533_v30 = vsel %vm745_vm1, %v4286_v23, 0.0  ;;  %3295 = vmatpush3.bf16.msra.mxu1 %v3292_v53 }
 0x422   : > { %1534 = vadd.xlane.f32.xlu0 %v1533_v30  ;;  %3297 = vmatprep.subr.bf16.mxu1 %v3296_v58 }
 0x425   : > { %3299 = vmatpush3.bf16.msra.mxu1 %v3296_v58 }
 0x492   : > { %v1496_v51 = vpop.xlane.xlu1 %1495 }
 0x493   : > { %v1540_v37 = vmul.f32 0.015625, %v1496_v51  ;;  %v1493_v2 = vpop.xlane.xlu0 %1492 }
 0x494   : > { %v1539_v62 = vmul.f32 0.015625, %v1493_v2 }
 0x495   : > { %v4305_v61 = vsub.f32 %v4199_v54, %v1540_v37 }
 0x496   : > { %v4308_v14 = vsub.f32 %v4202_v41, %v1539_v62  ;;  %v1502_v38 = vpop.xlane.xlu1 %1501 }
 0x497   : > { %v1542_v52 = vmul.f32 0.015625, %v1502_v38  ;;  %v1499_v12 = vpop.xlane.xlu0 %1498  ;;  %v1572_v5 = vmul.f32 %v4305_v61, %v4305_v61 }
 0x498   : > { %v1541_v49 = vmul.f32 0.015625, %v1499_v12  ;;  %v1571_v32 = vmul.f32 %v4308_v14, %v4308_v14 }
 0x499   : > { %v4315_v7 = vsub.f32 %v4211_v60, %v1542_v52  ;;  %v1590_v63 = vsel %vm745_vm1, %v1572_v5, 0.0 }
 0x49a   : > { %v4319_v27 = vsub.f32 %v4214_v59, %v1541_v49  ;;  %v1508_v48 = vpop.xlane.xlu1 %1507  ;;  %1591 = vadd.xlane.f32.xlu1 %v1590_v63  ;;  %v1587_v18 = vsel %vm745_vm1, %v1571_v32, 0.0 }
 0x49b   : > { %v1544_v44 = vmul.f32 0.015625, %v1508_v48  ;;  %1588 = vadd.xlane.f32.xlu0 %v1587_v18  ;;  %v1505_v10 = vpop.xlane.xlu0 %1504  ;;  %v1574_v17 = vmul.f32 %v4315_v7, %v4315_v7 }
 0x49c   : > { %v1543_v45 = vmul.f32 0.015625, %v1505_v10  ;;  %v1573_v21 = vmul.f32 %v4319_v27, %v4319_v27 }
 0x49d   : > { %v4327_v20 = vsub.f32 %v4223_v33, %v1544_v44  ;;  %v1596_v55 = vsel %vm745_vm1, %v1574_v17, 0.0 }
 0x49e   : > { %v4331_v11 = vsub.f32 %v4226_v6, %v1543_v45  ;;  %v1514_v40 = vpop.xlane.xlu1 %1513  ;;  %1597 = vadd.xlane.f32.xlu1 %v1596_v55  ;;  %v1593_v56 = vsel %vm745_vm1, %v1573_v21, 0.0 }
 0x49f   : > { %v1546_v28 = vmul.f32 0.015625, %v1514_v40  ;;  %1594 = vadd.xlane.f32.xlu0 %v1593_v56  ;;  %v1511_v39 = vpop.xlane.xlu0 %1510  ;;  %v1576_v3 = vmul.f32 %v4327_v20, %v4327_v20 }
 0x4a0   : > { %v1545_v34 = vmul.f32 0.015625, %v1511_v39  ;;  %v1575_v35 = vmul.f32 %v4331_v11, %v4331_v11 }
 0x4a1   : > { %v4339_v4 = vsub.f32 %v4235_v8, %v1546_v28  ;;  %v1602_v29 = vsel %vm745_vm1, %v1576_v3, 0.0 }
 0x4a2   : > { %v4343_v42 = vsub.f32 %v4238_v0, %v1545_v34  ;;  %v1520_v15 = vpop.xlane.xlu1 %1519  ;;  %1603 = vadd.xlane.f32.xlu1 %v1602_v29  ;;  %v1599_v47 = vsel %vm745_vm1, %v1575_v35, 0.0 }
 0x4a3   : > { %v1548_v9 = vmul.f32 0.015625, %v1520_v15  ;;  %1600 = vadd.xlane.f32.xlu0 %v1599_v47  ;;  %v1517_v16 = vpop.xlane.xlu0 %1516  ;;  %v1578_v50 = vmul.f32 %v4339_v4, %v4339_v4 }
 0x4a4   : > { %v1547_v24 = vmul.f32 0.015625, %v1517_v16  ;;  %v1577_v30 = vmul.f32 %v4343_v42, %v4343_v42 }
 0x4a5   : > { %v4351_v25 = vsub.f32 %v4247_v22, %v1548_v9  ;;  %v1608_v46 = vsel %vm745_vm1, %v1578_v50, 0.0 }
 0x4a6   : > { %v4355_v36 = vsub.f32 %v4250_v26, %v1547_v24  ;;  %v1526_v53 = vpop.xlane.xlu1 %1525  ;;  %1609 = vadd.xlane.f32.xlu1 %v1608_v46  ;;  %v1605_v57 = vsel %vm745_vm1, %v1577_v30, 0.0  ;;  %v2834_v24 = vld [vmem:[%s4996_s5 + $0x60] sm:$0xff]  ;;  %v2835_v30 = vld [vmem:[%s4996_s5 + $0x68] sm:$0xff] }
 0x4a7   : > { %v1550_v58 = vmul.f32 0.015625, %v1526_v53  ;;  %1606 = vadd.xlane.f32.xlu0 %v1605_v57  ;;  %v1523_v51 = vpop.xlane.xlu0 %1522  ;;  %v1580_v37 = vmul.f32 %v4351_v25, %v4351_v25  ;;  %v3300_v46 = vpack.c.bf16 %v2835_v30, %v2834_v24  ;;  %v2836_v53 = vld [vmem:[%s4996_s5 + $0x70] sm:$0xff]  ;;  %v2837_v57 = vld [vmem:[%s4996_s5 + $0x78] sm:$0xff] }
 0x4a8   : > { %v1549_v2 = vmul.f32 0.015625, %v1523_v51  ;;  %v1579_v62 = vmul.f32 %v4355_v36, %v4355_v36  ;;  %v2856_v51 = vld [vmem:[%s4998_s7 + $0x80] sm:$0xff] }
 0x4a9   : > { %v4363_v38 = vsub.f32 %v4259_v31, %v1550_v58  ;;  %v1614_v52 = vsel %vm745_vm1, %v1580_v37, 0.0  ;;  %3301 = vmatprep.subr.bf16.mxu1 %v3300_v46  ;;  %v3304_v58 = vpack.c.bf16 %v2837_v57, %v2836_v53  ;;  %v2857_v37 = vld [vmem:[%s4998_s7 + $0x88] sm:$0xff] }
 0x4aa   : > { %v4367_v12 = vsub.f32 %v4262_v1, %v1549_v2  ;;  %v1532_v5 = vpop.xlane.xlu1 %1531  ;;  %1615 = vadd.xlane.f32.xlu1 %v1614_v52  ;;  %v1611_v49 = vsel %vm745_vm1, %v1579_v62, 0.0  ;;  %3303 = vmatpush3.bf16.msra.mxu1 %v3300_v46  ;;  %v2858_v2 = vld [vmem:[%s4998_s7 + $0x90] sm:$0xff]  ;;  %v4421_v62 = vpack.c.bf16 %v2857_v37, %v2856_v51  ;;  %v2859_v52 = vld [vmem:[%s4998_s7 + $0x98] sm:$0xff]  ;;  %v4446_v51 = vld [vmem:[%s4994_s3 + $0x1] ss:$0 sm:$0xff] }
 0x4ab   : > { %v1552_v32 = vmul.f32 0.015625, %v1532_v5  ;;  %1612 = vadd.xlane.f32.xlu0 %v1611_v49  ;;  %v1529_v63 = vpop.xlane.xlu0 %1528  ;;  %v1582_v48 = vmul.f32 %v4363_v38, %v4363_v38  ;;  %3305 = vmatprep.subr.bf16.mxu1 %v3304_v58  ;;  %v4426_v5 = vpack.c.bf16 %v2859_v52, %v2858_v2  ;;  %v2860_v49 = vld [vmem:[%s4998_s7 + $0xa0] sm:$0xff] }
 0x4ac   : > { %v1551_v18 = vmul.f32 0.015625, %v1529_v63  ;;  %v1581_v44 = vmul.f32 %v4367_v12, %v4367_v12  ;;  %3309 = vmatprep.subr.bf16.mxu0 %v4421_v62 }
 0x4ad   : > { %v4375_v10 = vsub.f32 %v4271_v13, %v1552_v32  ;;  %v1620_v17 = vsel %vm745_vm1, %v1582_v48, 0.0  ;;  %v2861_v32 = vld [vmem:[%s4998_s7 + $0xa8] sm:$0xff]  ;;  %3311 = vmatpush3.bf16.msra.mxu0 %v4421_v62 }
 0x4ae   : > { %v4379_v45 = vsub.f32 %v4274_v19, %v1551_v18  ;;  %1621 = vadd.xlane.f32.xlu1 %v1620_v17  ;;  %v1538_v21 = vpop.xlane.xlu1 %1537  ;;  %v1617_v55 = vsel %vm745_vm1, %v1581_v44, 0.0  ;;  %3307 = vmatpush3.bf16.msra.mxu1 %v3304_v58  ;;  %v4438_v63 = vpack.c.bf16 %v2861_v32, %v2860_v49 }
 0x4af   : > { %v1554_v40 = vmul.f32 0.015625, %v1538_v21  ;;  %1618 = vadd.xlane.f32.xlu0 %v1617_v55  ;;  %v1535_v56 = vpop.xlane.xlu0 %1534  ;;  %v1584_v28 = vmul.f32 %v4375_v10, %v4375_v10  ;;  %3340 = vmatprep.subr.bf16.mxu1 %v4421_v62 }
 0x4b0   : > { %v1553_v39 = vmul.f32 0.015625, %v1535_v56  ;;  %v1583_v3 = vmul.f32 %v4379_v45, %v4379_v45  ;;  %3313 = vmatprep.subr.bf16.mxu0 %v4426_v5 }
 0x4b1   : > { %v4387_v34 = vsub.f32 %v4283_v43, %v1554_v40  ;;  %v1626_v35 = vsel %vm745_vm1, %v1584_v28, 0.0  ;;  %3315 = vmatpush3.bf16.msra.mxu0 %v4426_v5 }
 0x4b2   : > { %v4391_v29 = vsub.f32 %v4286_v23, %v1553_v39  ;;  %1627 = vadd.xlane.f32.xlu1 %v1626_v35  ;;  %v1623_v15 = vsel %vm745_vm1, %v1583_v3, 0.0  ;;  %3317 = vmatprep.subr.bf16.mxu0 %v4438_v63 }
 0x4b3   : > { %1624 = vadd.xlane.f32.xlu0 %v1623_v15  ;;  %v1586_v47 = vmul.f32 %v4387_v34, %v4387_v34 }
 0x4b4   : > { %v1585_v9 = vmul.f32 %v4391_v29, %v4391_v29 }
 0x4b5   : > { %v1632_v16 = vsel %vm745_vm1, %v1586_v47, 0.0  ;;  %3319 = vmatpush3.bf16.msra.mxu0 %v4438_v63 }
 0x4b6   : > { %1633 = vadd.xlane.f32.xlu1 %v1632_v16  ;;  %v1629_v50 = vsel %vm745_vm1, %v1585_v9, 0.0 }
 0x4b7   : > { %1630 = vadd.xlane.f32.xlu0 %v1629_v50 }
 0x527   : > { %v1592_v48 = vpop.xlane.xlu1 %1591 }
 0x528   : > { %v1636_v18 = vmul.f32 0.015625, %v1592_v48  ;;  %v1589_v44 = vpop.xlane.xlu0 %1588 }
 0x529   : > { %v1635_v17 = vmul.f32 0.015625, %v1589_v44 }
 0x52a   : > { %v1652_v21 = vadd.f32 1e-05, %v1636_v18 }
 0x52b   : > { %v1651_v55 = vadd.f32 1e-05, %v1635_v17  ;;  %v1598_v40 = vpop.xlane.xlu1 %1597  ;;  %v4453_v17 = vld [vmem:[%s4995_s4 + $0x1] ss:$0 sm:$0xff] }
 0x52c   : > { %3494 = vrsqrt.f32 %v1652_v21  ;;  %v1638_v56 = vmul.f32 0.015625, %v1598_v40  ;;  %v1595_v28 = vpop.xlane.xlu0 %1594 }
 0x52d   : > { %3496 = vrsqrt.f32 %v1651_v55  ;;  %v1637_v39 = vmul.f32 0.015625, %v1595_v28 }
 0x52e   : > { %v1654_v3 = vadd.f32 1e-05, %v1638_v56 }
 0x52f   : > { %v1653_v35 = vadd.f32 1e-05, %v1637_v39  ;;  %v1604_v15 = vpop.xlane.xlu1 %1603 }
 0x530   : > { %3498 = vrsqrt.f32 %v1654_v3  ;;  %v1640_v47 = vmul.f32 0.015625, %v1604_v15  ;;  %v1601_v9 = vpop.xlane.xlu0 %1600 }
 0x531   : > { %3500 = vrsqrt.f32 %v1653_v35  ;;  %v1639_v16 = vmul.f32 0.015625, %v1601_v9 }
 0x532   : > { %v1656_v50 = vadd.f32 1e-05, %v1640_v47 }
 0x533   : > { %v1655_v24 = vadd.f32 1e-05, %v1639_v16  ;;  %v1610_v30 = vpop.xlane.xlu1 %1609 }
 0x534   : > { %3502 = vrsqrt.f32 %v1656_v50  ;;  %v1642_v46 = vmul.f32 0.015625, %v1610_v30  ;;  %v1607_v53 = vpop.xlane.xlu0 %1606 }
 0x535   : > { %3504 = vrsqrt.f32 %v1655_v24  ;;  %v1641_v57 = vmul.f32 0.015625, %v1607_v53 }
 0x536   : > { %v3495_v58 = vpop.eup %3494  ;;  %v1658_v37 = vadd.f32 1e-05, %v1642_v46 }
 0x537   : > { %v3497_v2 = vpop.eup %3496  ;;  %v1684_v52 = vmul.f32 %v3495_v58, %v4305_v61  ;;  %v1657_v49 = vadd.f32 1e-05, %v1641_v57  ;;  %v1616_v32 = vpop.xlane.xlu1 %1615 }
 0x538   : > { %3506 = vrsqrt.f32 %v1658_v37  ;;  %v1644_v48 = vmul.f32 0.015625, %v1616_v32  ;;  %v1613_v18 = vpop.xlane.xlu0 %1612  ;;  %v1683_v44 = vmul.f32 %v3497_v2, %v4308_v14 }
 0x539   : > { %v1706_v21 = vmul.f32 %v4446_v51, %v1684_v52  ;;  %3508 = vrsqrt.f32 %v1657_v49  ;;  %v1643_v55 = vmul.f32 0.015625, %v1613_v18 }
 0x53a   : > { %v3499_v40 = vpop.eup %3498  ;;  %v1660_v56 = vadd.f32 1e-05, %v1644_v48  ;;  %v1705_v61 = vmul.f32 %v4446_v51, %v1683_v44 }
 0x53b   : > { %v3501_v28 = vpop.eup %3500  ;;  %v1659_v39 = vadd.f32 1e-05, %v1643_v55  ;;  %v1622_v3 = vpop.xlane.xlu1 %1621  ;;  %v1686_v35 = vmul.f32 %v3499_v40, %v4315_v7  ;;  %v1728_v16 = vadd.f32 %v4453_v17, %v1706_v21 }
 0x53c   : > { %3510 = vrsqrt.f32 %v1660_v56  ;;  %v1646_v14 = vmul.f32 0.015625, %v1622_v3  ;;  %v1619_v15 = vpop.xlane.xlu0 %1618  ;;  %v1727_v47 = vadd.f32 %v4453_v17, %v1705_v61  ;;  %v1685_v9 = vmul.f32 %v3501_v28, %v4319_v27 }
 0x53d   : > { %3512 = vrsqrt.f32 %v1659_v39  ;;  %v1645_v50 = vmul.f32 0.015625, %v1619_v15  ;;  %v1708_v24 = vmul.f32 %v4446_v51, %v1686_v35 }
 0x53e   : > { %v3503_v30 = vpop.eup %3502  ;;  %v1662_v46 = vadd.f32 1e-05, %v1646_v14  ;;  %3156 = vmatprep.mubr.msk.f32.mxu1 %vm745_vm1, %v1727_v47  ;;  %v1707_v53 = vmul.f32 %v4446_v51, %v1685_v9 }
 0x53f   : > { %v3505_v7 = vpop.eup %3504  ;;  %v1661_v57 = vadd.f32 1e-05, %v1645_v50  ;;  %v1628_v58 = vpop.xlane.xlu1 %1627  ;;  %3157 = vmatmul.mubr.msk.f32.vlgmr.msra.gmra.mrb[16].mxu1 %vm745_vm1, %v1728_v16  ;;  %v1688_v37 = vmul.f32 %v3503_v30, %v4327_v20  ;;  %v1730_v48 = vadd.f32 %v4453_v17, %v1708_v24 }
 0x540   : > { %3514 = vrsqrt.f32 %v1662_v46  ;;  %v1648_v27 = vmul.f32 0.015625, %v1628_v58  ;;  %v1625_v2 = vpop.xlane.xlu0 %1624  ;;  %v1729_v52 = vadd.f32 %v4453_v17, %v1707_v53  ;;  %v1687_v49 = vmul.f32 %v3505_v7, %v4331_v11  ;;  %3348 = vmatpush3.bf16.msra.mxu1 %v4421_v62 }
 0x541   : > { %3516 = vrsqrt.f32 %v1661_v57  ;;  %v1647_v32 = vmul.f32 0.015625, %v1625_v2  ;;  %v1710_v18 = vmul.f32 %v4446_v51, %v1688_v37  ;;  %3341 = vmatprep.subr.bf16.mxu1 %v4426_v5 }
 0x542   : > { %v3507_v44 = vpop.eup %3506  ;;  %v1664_v21 = vadd.f32 1e-05, %v1648_v27  ;;  %3159 = vmatprep.mubr.msk.f32.mxu1 %vm745_vm1, %v1729_v52  ;;  %v1709_v20 = vmul.f32 %v4446_v51, %v1687_v49 }
 0x543   : > { %v3509_v55 = vpop.eup %3508  ;;  %v1663_v40 = vadd.f32 1e-05, %v1647_v32  ;;  %v1634_v56 = vpop.xlane.xlu1 %1633  ;;  %3160 = vmatmul.mubr.msk.f32.gmra.mrb[18].mxu1 %vm745_vm1, %v1730_v48  ;;  %v1690_v11 = vmul.f32 %v3507_v44, %v4339_v4  ;;  %v1732_v35 = vadd.f32 %v4453_v17, %v1710_v18 }
 0x544   : > { %3518 = vrsqrt.f32 %v1664_v21  ;;  %v1650_v62 = vmul.f32 0.015625, %v1634_v56  ;;  %v1631_v61 = vpop.xlane.xlu0 %1630  ;;  %v1731_v28 = vadd.f32 %v4453_v17, %v1709_v20  ;;  %v1689_v39 = vmul.f32 %v3509_v55, %v4343_v42  ;;  %3349 = vmatpush3.bf16.msra.mxu1 %v4426_v5 }
 0x545   : > { %3520 = vrsqrt.f32 %v1663_v40  ;;  %v1649_v3 = vmul.f32 0.015625, %v1631_v61  ;;  %v1712_v14 = vmul.f32 %v4446_v51, %v1690_v11  ;;  %3342 = vmatprep.subr.bf16.mxu1 %v4438_v63 }
 0x546   : > { %v3511_v15 = vpop.eup %3510  ;;  %v1666_v47 = vadd.f32 1e-05, %v1650_v62  ;;  %3162 = vmatprep.mubr.msk.f32.mxu1 %vm745_vm1, %v1731_v28  ;;  %v1711_v4 = vmul.f32 %v4446_v51, %v1689_v39  ;;  %v2866_v28 = vld [vmem:[%s4998_s7 + $0xd0] sm:$0xff]  ;;  %v2867_v39 = vld [vmem:[%s4998_s7 + $0xd8] sm:$0xff] }
 0x547   : > { %v3513_v9 = vpop.eup %3512  ;;  %v1665_v16 = vadd.f32 1e-05, %v1649_v3  ;;  %3163 = vmatmul.mubr.msk.f32.gmra.mrb[20].mxu1 %vm745_vm1, %v1732_v35  ;;  %v1692_v42 = vmul.f32 %v3511_v15, %v4351_v25  ;;  %v1734_v24 = vadd.f32 %v4453_v17, %v1712_v14  ;;  %v3328_v3 = vpack.c.bf16 %v2867_v39, %v2866_v28  ;;  %v2868_v35 = vld [vmem:[%s4998_s7 + $0xe0] sm:$0xff]  ;;  %v2869_v14 = vld [vmem:[%s4998_s7 + $0xe8] sm:$0xff] }
 0x548   : > { %3522 = vrsqrt.f32 %v1666_v47  ;;  %v1733_v5 = vadd.f32 %v4453_v17, %v1711_v4  ;;  %v1691_v50 = vmul.f32 %v3513_v9, %v4355_v36  ;;  %3350 = vmatpush3.bf16.msra.mxu1 %v4438_v63  ;;  %v3332_v15 = vpack.c.bf16 %v2869_v14, %v2868_v35  ;;  %v2870_v47 = vld [vmem:[%s4998_s7 + $0xf0] sm:$0xff]  ;;  %v2871_v4 = vld [vmem:[%s4998_s7 + $0xf8] sm:$0xff] }
 0x549   : > { %3524 = vrsqrt.f32 %v1665_v16  ;;  %v1714_v30 = vmul.f32 %v4446_v51, %v1692_v42  ;;  %v3336_v9 = vpack.c.bf16 %v2871_v4, %v2870_v47  ;;  %v4555_v16 = vld [vmem:[%s4997_s6 + $0x1] ss:$0 sm:$0xff] }
 0x54a   : > { %v3515_v46 = vpop.eup %3514  ;;  %3165 = vmatprep.mubr.msk.f32.mxu1 %vm745_vm1, %v1733_v5  ;;  %v1713_v53 = vmul.f32 %v4446_v51, %v1691_v50 }
 0x54b   : > { %v3517_v7 = vpop.eup %3516  ;;  %3166 = vmatmul.mubr.msk.f32.gmra.mrb[22].mxu1 %vm745_vm1, %v1734_v24  ;;  %v1694_v25 = vmul.f32 %v3515_v46, %v4363_v38  ;;  %v1736_v63 = vadd.f32 %v4453_v17, %v1714_v30 }
 0x54c   : > { %v1735_v57 = vadd.f32 %v4453_v17, %v1713_v53  ;;  %v1693_v36 = vmul.f32 %v3517_v7, %v4367_v12 }
 0x54d   : > { %v1716_v58 = vmul.f32 %v4446_v51, %v1694_v25 }
 0x54e   : > { %v3519_v37 = vpop.eup %3518  ;;  %3168 = vmatprep.mubr.msk.f32.mxu1 %vm745_vm1, %v1735_v57  ;;  %v1715_v27 = vmul.f32 %v4446_v51, %v1693_v36 }
 0x54f   : > { %v3521_v2 = vpop.eup %3520  ;;  %3169 = vmatmul.mubr.msk.f32.gmra.mrb[24].mxu1 %vm745_vm1, %v1736_v63  ;;  %v1696_v52 = vmul.f32 %v3519_v37, %v4375_v10  ;;  %v1738_v12 = vadd.f32 %v4453_v17, %v1716_v58 }
 0x550   : > { %v1737_v38 = vadd.f32 %v4453_v17, %v1715_v27  ;;  %v1695_v49 = vmul.f32 %v3521_v2, %v4379_v45 }
 0x551   : > { %v1718_v32 = vmul.f32 %v4446_v51, %v1696_v52 }
 0x552   : > { %v3523_v48 = vpop.eup %3522  ;;  %3171 = vmatprep.mubr.msk.f32.mxu1 %vm745_vm1, %v1737_v38  ;;  %v1717_v18 = vmul.f32 %v4446_v51, %v1695_v49 }
 0x553   : > { %v3525_v44 = vpop.eup %3524  ;;  %3172 = vmatmul.mubr.msk.f32.gmra.mrb[26].mxu1 %vm745_vm1, %v1738_v12  ;;  %v1698_v21 = vmul.f32 %v3523_v48, %v4387_v34  ;;  %v1740_v45 = vadd.f32 %v4453_v17, %v1718_v32  ;;  %v2862_v34 = vld [vmem:[%s4998_s7 + $0xb0] sm:$0xff] }
 0x554   : > { %v1739_v10 = vadd.f32 %v4453_v17, %v1717_v18  ;;  %v1697_v20 = vmul.f32 %v3525_v44, %v4391_v29  ;;  %v2863_v29 = vld [vmem:[%s4998_s7 + $0xb8] sm:$0xff] }
 0x555   : > { %v1720_v55 = vmul.f32 %v4446_v51, %v1698_v21  ;;  %v3320_v62 = vpack.c.bf16 %v2863_v29, %v2862_v34 }
 0x556   : > { %3174 = vmatprep.mubr.msk.f32.mxu1 %vm745_vm1, %v1739_v10  ;;  %v1719_v40 = vmul.f32 %v4446_v51, %v1697_v20  ;;  %v2864_v51 = vld [vmem:[%s4998_s7 + $0xc0] sm:$0xff] }
 0x557   : > { %3175 = vmatmul.mubr.msk.f32.gmra.mrb[28].mxu1 %vm745_vm1, %v1740_v45  ;;  %v1742_v11 = vadd.f32 %v4453_v17, %v1720_v55  ;;  %3321 = vmatprep.subr.bf16.mxu0 %v3320_v62 }
 0x558   : > { %v1741_v56 = vadd.f32 %v4453_v17, %v1719_v40  ;;  %3343 = vmatprep.subr.bf16.mxu1 %v3320_v62  ;;  %3323 = vmatpush3.bf16.msra.mxu0 %v3320_v62  ;;  %v2865_v17 = vld [vmem:[%s4998_s7 + $0xc8] sm:$0xff] }
 0x559   : > { %3351 = vmatpush3.bf16.msra.mxu1 %v3320_v62  ;;  %v3324_v61 = vpack.c.bf16 %v2865_v17, %v2864_v51 }
 0x55a   : > { %3177 = vmatprep.mubr.msk.f32.mxu1 %vm745_vm1, %v1741_v56 }
 0x55b   : > { %3178 = vmatmul.mubr.msk.f32.gmra.mrb[30].mxu1 %vm745_vm1, %v1742_v11  ;;  %3325 = vmatprep.subr.bf16.mxu0 %v3324_v61 }
 0x55c   : > { %3344 = vmatprep.subr.bf16.mxu1 %v3324_v61  ;;  %3327 = vmatpush3.bf16.msra.mxu0 %v3324_v61 }
 0x55d   : > { %3352 = vmatpush3.bf16.msra.mxu1 %v3324_v61  ;;  %3329 = vmatprep.subr.bf16.mxu0 %v3328_v3 }
 0x55e   : > { %3345 = vmatprep.subr.bf16.mxu1 %v3328_v3 }
 0x560   : > { %3331 = vmatpush3.bf16.msra.mxu0 %v3328_v3 }
 0x561   : > { %3353 = vmatpush3.bf16.msra.mxu1 %v3328_v3  ;;  %3333 = vmatprep.subr.bf16.mxu0 %v3332_v15 }
 0x562   : > { %3346 = vmatprep.subr.bf16.mxu1 %v3332_v15 }
 0x564   : > { %3335 = vmatpush3.bf16.msra.mxu0 %v3332_v15 }
 0x565   : > { %3354 = vmatpush3.bf16.msra.mxu1 %v3332_v15  ;;  %3337 = vmatprep.subr.bf16.mxu0 %v3336_v9 }
 0x566   : > { %3347 = vmatprep.subr.bf16.mxu1 %v3336_v9 }
 0x568   : > { %3339 = vmatpush3.bf16.msra.mxu0 %v3336_v9 }
 0x569   : > { %3355 = vmatpush3.bf16.msra.mxu1 %v3336_v9 }
 0x612   : > { %v3158_v42 = vpop.f32.mrb[16].mxu1 }
 0x613   : > { %v1880_v5 = vadd.f32 %v3158_v42, %v4555_v16  ;;  %v1874_v50 = vpop.f32.mrb[17].mxu1 }
 0x614   : > { %v1875_v24 = vadd.f32 %v4555_v16, %v1874_v50 }
 0x615   : > { %v1970_v30 = vmul.f32 0.70710677, %v1880_v5  ;;  %v1954_v34 = vmul.f32 0.5, %v1880_v5 }
 0x616   : > { %v1969_v46 = vmul.f32 0.70710677, %v1875_v24  ;;  %v3161_v53 = vpop.f32.mrb[18].mxu1  ;;  %v1953_v55 = vmul.f32 0.5, %v1875_v24 }
 0x617   : > { %3526 = verf.f32 %v1970_v30  ;;  %v1890_v7 = vadd.f32 %v3161_v53, %v4555_v16  ;;  %v1884_v25 = vpop.f32.mrb[19].mxu1 }
 0x618   : > { %3528 = verf.f32 %v1969_v46  ;;  %v1885_v57 = vadd.f32 %v4555_v16, %v1884_v25 }
 0x619   : > { %v1972_v36 = vmul.f32 0.70710677, %v1890_v7  ;;  %v1956_v9 = vmul.f32 0.5, %v1890_v7 }
 0x61a   : > { %v1971_v63 = vmul.f32 0.70710677, %v1885_v57  ;;  %v3164_v58 = vpop.f32.mrb[20].mxu1  ;;  %v1955_v14 = vmul.f32 0.5, %v1885_v57 }
 0x61b   : > { %3530 = verf.f32 %v1972_v36  ;;  %v1900_v37 = vadd.f32 %v3164_v58, %v4555_v16  ;;  %v1894_v27 = vpop.f32.mrb[21].mxu1 }
 0x61c   : > { %3532 = verf.f32 %v1971_v63  ;;  %v1895_v2 = vadd.f32 %v4555_v16, %v1894_v27 }
 0x61d   : > { %v1974_v52 = vmul.f32 0.70710677, %v1900_v37  ;;  %v1958_v7 = vmul.f32 0.5, %v1900_v37 }
 0x61e   : > { %v1973_v38 = vmul.f32 0.70710677, %v1895_v2  ;;  %v3167_v49 = vpop.f32.mrb[22].mxu1  ;;  %v1957_v36 = vmul.f32 0.5, %v1895_v2 }
 0x61f   : > { %3534 = verf.f32 %v1974_v52  ;;  %v4564_v12 = vadd.f32 %v3167_v49, %v4555_v16  ;;  %v1904_v32 = vpop.f32.mrb[23].mxu1 }
 0x620   : > { %3536 = verf.f32 %v1973_v38  ;;  %v1905_v48 = vadd.f32 %v4555_v16, %v1904_v32 }
 0x621   : > { %v3527_v18 = vpop.eup %3526  ;;  %v1976_v44 = vmul.f32 0.70710677, %v4564_v12  ;;  %v1960_v37 = vmul.f32 0.5, %v4564_v12 }
 0x622   : > { %v3529_v21 = vpop.eup %3528  ;;  %v2002_v10 = vadd.f32 1.0, %v3527_v18  ;;  %v1975_v20 = vmul.f32 0.70710677, %v1905_v48  ;;  %v3170_v45 = vpop.f32.mrb[24].mxu1  ;;  %v1959_v2 = vmul.f32 0.5, %v1905_v48 }
 0x623   : > { %v2001_v40 = vadd.f32 1.0, %v3529_v21  ;;  %3538 = verf.f32 %v1976_v44  ;;  %v4569_v56 = vadd.f32 %v3170_v45, %v4555_v16  ;;  %v1914_v11 = vpop.f32.mrb[25].mxu1 }
 0x624   : > { %3540 = verf.f32 %v1975_v20  ;;  %v1915_v29 = vadd.f32 %v4555_v16, %v1914_v11  ;;  %v2018_v28 = vmul.f32 %v2002_v10, %v1954_v34 }
 0x625   : > { %v3531_v62 = vpop.eup %3530  ;;  %v1978_v51 = vmul.f32 0.70710677, %v4569_v56  ;;  %v2017_v17 = vmul.f32 %v2001_v40, %v1953_v55 }
 0x626   : > { %v3533_v61 = vpop.eup %3532  ;;  %v2004_v39 = vadd.f32 1.0, %v3531_v62  ;;  %v1977_v3 = vmul.f32 0.70710677, %v1915_v29  ;;  %v3173_v35 = vpop.f32.mrb[26].mxu1  ;;  %v1961_v48 = vmul.f32 0.5, %v1915_v29 }
 0x627   : > { %v2003_v15 = vadd.f32 1.0, %v3533_v61  ;;  %3542 = verf.f32 %v1978_v51  ;;  %v4574_v47 = vadd.f32 %v3173_v35, %v4555_v16  ;;  %v1924_v4 = vpop.f32.mrb[27].mxu1  ;;  %3212 = vmatprep.mubr.f32.mxu0 %v2017_v17  ;;  %v1962_v35 = vmul.f32 0.5, %v4569_v56 }
 0x628   : > { %3544 = verf.f32 %v1977_v3  ;;  %v1925_v42 = vadd.f32 %v4555_v16, %v1924_v4  ;;  %3213 = vmatmul.mubr.f32.vlgmr.msra.gmra.mrb[32].mxu0 %v2018_v28  ;;  %v2020_v57 = vmul.f32 %v2004_v39, %v1956_v9 }
 0x629   : > { %v3535_v5 = vpop.eup %3534  ;;  %v1980_v50 = vmul.f32 0.70710677, %v4574_v47  ;;  %v2019_v24 = vmul.f32 %v2003_v15, %v1955_v14 }
 0x62a   : > { %v3537_v30 = vpop.eup %3536  ;;  %v2006_v46 = vadd.f32 1.0, %v3535_v5  ;;  %v1979_v53 = vmul.f32 0.70710677, %v1925_v42  ;;  %v3176_v25 = vpop.f32.mrb[28].mxu1  ;;  %v1963_v9 = vmul.f32 0.5, %v1925_v42 }
 0x62b   : > { %v2005_v63 = vadd.f32 1.0, %v3537_v30  ;;  %3546 = verf.f32 %v1980_v50  ;;  %v1940_v58 = vadd.f32 %v3176_v25, %v4555_v16  ;;  %v1934_v27 = vpop.f32.mrb[29].mxu1  ;;  %3215 = vmatprep.mubr.f32.mxu0 %v2019_v24  ;;  %v1964_v50 = vmul.f32 0.5, %v4574_v47 }
 0x62c   : > { %3548 = verf.f32 %v1979_v53  ;;  %v1935_v52 = vadd.f32 %v4555_v16, %v1934_v27  ;;  %3216 = vmatmul.mubr.f32.gmra.mrb[34].mxu0 %v2020_v57  ;;  %v2022_v20 = vmul.f32 %v2006_v46, %v1958_v7 }
 0x62d   : > { %v3539_v38 = vpop.eup %3538  ;;  %v1982_v49 = vmul.f32 0.70710677, %v1940_v58  ;;  %v2021_v32 = vmul.f32 %v2005_v63, %v1957_v36  ;;  %v1966_v57 = vmul.f32 0.5, %v1940_v58  ;;  %v4588_v58 = vld [vmem:[%s4999_s8 + $0x1] ss:$0 sm:$0xff] }
 0x62e   : > { %v3541_v18 = vpop.eup %3540  ;;  %v2008_v44 = vadd.f32 1.0, %v3539_v38  ;;  %v1981_v21 = vmul.f32 0.70710677, %v1935_v52  ;;  %v3179_v10 = vpop.f32.mrb[30].mxu1  ;;  %v1965_v25 = vmul.f32 0.5, %v1935_v52 }
 0x62f   : > { %v2007_v45 = vadd.f32 1.0, %v3541_v18  ;;  %3550 = verf.f32 %v1982_v49  ;;  %v1950_v55 = vadd.f32 %v3179_v10, %v4555_v16  ;;  %v1944_v40 = vpop.f32.mrb[31].mxu1  ;;  %3218 = vmatprep.mubr.f32.mxu0 %v2021_v32 }
 0x630   : > { %3552 = verf.f32 %v1981_v21  ;;  %v1945_v11 = vadd.f32 %v4555_v16, %v1944_v40  ;;  %3219 = vmatmul.mubr.f32.gmra.mrb[36].mxu0 %v2022_v20  ;;  %v2024_v39 = vmul.f32 %v2008_v44, %v1960_v37 }
 0x631   : > { %v3543_v34 = vpop.eup %3542  ;;  %v1984_v62 = vmul.f32 0.70710677, %v1950_v55  ;;  %v2023_v51 = vmul.f32 %v2007_v45, %v1959_v2  ;;  %v1968_v47 = vmul.f32 0.5, %v1950_v55 }
 0x632   : > { %v3545_v17 = vpop.eup %3544  ;;  %v2010_v61 = vadd.f32 1.0, %v3543_v34  ;;  %v1983_v28 = vmul.f32 0.70710677, %v1945_v11  ;;  %v1967_v38 = vmul.f32 0.5, %v1945_v11 }
 0x633   : > { %v2009_v3 = vadd.f32 1.0, %v3545_v17  ;;  %3554 = verf.f32 %v1984_v62  ;;  %3221 = vmatprep.mubr.f32.mxu0 %v2023_v51 }
 0x634   : > { %3556 = verf.f32 %v1983_v28  ;;  %3222 = vmatmul.mubr.f32.gmra.mrb[38].mxu0 %v2024_v39  ;;  %v2026_v4 = vmul.f32 %v2010_v61, %v1962_v35 }
 0x635   : > { %v3547_v12 = vpop.eup %3546  ;;  %v2025_v14 = vmul.f32 %v2009_v3, %v1961_v48 }
 0x636   : > { %v3549_v15 = vpop.eup %3548  ;;  %v2012_v16 = vadd.f32 1.0, %v3547_v12 }
 0x637   : > { %v2011_v5 = vadd.f32 1.0, %v3549_v15  ;;  %3224 = vmatprep.mubr.f32.mxu0 %v2025_v14 }
 0x638   : > { %3225 = vmatmul.mubr.f32.gmra.mrb[40].mxu0 %v2026_v4  ;;  %v2028_v46 = vmul.f32 %v2012_v16, %v1964_v50 }
 0x639   : > { %v3551_v24 = vpop.eup %3550  ;;  %v2027_v29 = vmul.f32 %v2011_v5, %v1963_v9 }
 0x63a   : > { %v3553_v30 = vpop.eup %3552  ;;  %v2014_v53 = vadd.f32 1.0, %v3551_v24 }
 0x63b   : > { %v2013_v56 = vadd.f32 1.0, %v3553_v30  ;;  %3227 = vmatprep.mubr.f32.mxu1 %v2027_v29 }
 0x63c   : > { %3228 = vmatmul.mubr.f32.vlgmr.msra.gmra.mrb[32].mxu1 %v2028_v46  ;;  %v2030_v42 = vmul.f32 %v2014_v53, %v1966_v57 }
 0x63d   : > { %v3555_v36 = vpop.eup %3554  ;;  %v2029_v63 = vmul.f32 %v2013_v56, %v1965_v25 }
 0x63e   : > { %v3557_v27 = vpop.eup %3556  ;;  %v2016_v7 = vadd.f32 1.0, %v3555_v36 }
 0x63f   : > { %v2015_v49 = vadd.f32 1.0, %v3557_v27  ;;  %3230 = vmatprep.mubr.f32.mxu1 %v2029_v63 }
 0x640   : > { %3231 = vmatmul.mubr.f32.gmra.mrb[34].mxu1 %v2030_v42  ;;  %v2032_v18 = vmul.f32 %v2016_v7, %v1968_v47 }
 0x641   : > { %v2031_v32 = vmul.f32 %v2015_v49, %v1967_v38 }
 0x643   : > { %3233 = vmatprep.mubr.f32.mxu1 %v2031_v32 }
 0x644   : > { %3234 = vmatmul.mubr.f32.gmra.mrb[36].mxu1 %v2032_v18 }
 0x6fb   : > { %v3214_v44 = vpop.f32.mrb[32].mxu0 }
 0x6fc   : > { %v2196_v52 = vadd.f32 %v3214_v44, %v4199_v54  ;;  %v2116_v21 = vpop.f32.mrb[33].mxu0 }
 0x6fd   : > { %v2195_v10 = vadd.f32 %v2116_v21, %v4202_v41 }
 0x6fe   : > { %v4593_v20 = vadd.f32 %v4588_v58, %v2196_v52 }
 0x6ff   : > { %v3217_v2 = vpop.f32.mrb[34].mxu0  ;;  %v4596_v45 = vadd.f32 %v4588_v58, %v2195_v10 }
 0x700   : > { %v2198_v55 = vadd.f32 %v3217_v2, %v4211_v60  ;;  %v2126_v40 = vpop.f32.mrb[35].mxu0  ;;  %v2240_v37 = vsel %vm745_vm1, %v4593_v20, 0.0 }
 0x701   : > { %v2197_v11 = vadd.f32 %v2126_v40, %v4214_v59  ;;  %2241 = vadd.xlane.f32.xlu1 %v2240_v37  ;;  %v2237_v54 = vsel %vm745_vm1, %v4596_v45, 0.0 }
 0x702   : > { %2238 = vadd.xlane.f32.xlu0 %v2237_v54  ;;  %v4605_v41 = vadd.f32 %v4588_v58, %v2198_v55 }
 0x703   : > { %v3220_v34 = vpop.f32.mrb[36].mxu0  ;;  %v4608_v62 = vadd.f32 %v4588_v58, %v2197_v11 }
 0x704   : > { %v2200_v60 = vadd.f32 %v3220_v34, %v4223_v33  ;;  %v2136_v51 = vpop.f32.mrb[37].mxu0  ;;  %v2246_v17 = vsel %vm745_vm1, %v4605_v41, 0.0 }
 0x705   : > { %v2199_v59 = vadd.f32 %v2136_v51, %v4226_v6  ;;  %2247 = vadd.xlane.f32.xlu1 %v2246_v17  ;;  %v2243_v61 = vsel %vm745_vm1, %v4608_v62, 0.0 }
 0x706   : > { %2244 = vadd.xlane.f32.xlu0 %v2243_v61  ;;  %v4617_v28 = vadd.f32 %v4588_v58, %v2200_v60 }
 0x707   : > { %v3223_v39 = vpop.f32.mrb[38].mxu0  ;;  %v4620_v48 = vadd.f32 %v4588_v58, %v2199_v59 }
 0x708   : > { %v2202_v33 = vadd.f32 %v3223_v39, %v4235_v8  ;;  %v2146_v3 = vpop.f32.mrb[39].mxu0  ;;  %v2252_v35 = vsel %vm745_vm1, %v4617_v28, 0.0 }
 0x709   : > { %v2201_v6 = vadd.f32 %v2146_v3, %v4238_v0  ;;  %2253 = vadd.xlane.f32.xlu1 %v2252_v35  ;;  %v2249_v12 = vsel %vm745_vm1, %v4620_v48, 0.0 }
 0x70a   : > { %2250 = vadd.xlane.f32.xlu0 %v2249_v12  ;;  %v4629_v14 = vadd.f32 %v4588_v58, %v2202_v33 }
 0x70b   : > { %v3226_v15 = vpop.f32.mrb[40].mxu0  ;;  %v4632_v16 = vadd.f32 %v4588_v58, %v2201_v6 }
 0x70c   : > { %v2204_v8 = vadd.f32 %v3226_v15, %v4247_v22  ;;  %v2156_v4 = vpop.f32.mrb[41].mxu0  ;;  %v2258_v9 = vsel %vm745_vm1, %v4629_v14, 0.0 }
 0x70d   : > { %v2203_v0 = vadd.f32 %v2156_v4, %v4250_v26  ;;  %2259 = vadd.xlane.f32.xlu1 %v2258_v9  ;;  %v2255_v5 = vsel %vm745_vm1, %v4632_v16, 0.0 }
 0x70e   : > { %2256 = vadd.xlane.f32.xlu0 %v2255_v5  ;;  %v4641_v50 = vadd.f32 %v4588_v58, %v2204_v8 }
 0x70f   : > { %v3229_v24 = vpop.f32.mrb[32].mxu1  ;;  %v4644_v29 = vadd.f32 %v4588_v58, %v2203_v0 }
 0x710   : > { %v2206_v22 = vadd.f32 %v3229_v24, %v4259_v31  ;;  %v2166_v30 = vpop.f32.mrb[33].mxu1  ;;  %v2264_v46 = vsel %vm745_vm1, %v4641_v50, 0.0 }
 0x711   : > { %v2205_v26 = vadd.f32 %v2166_v30, %v4262_v1  ;;  %2265 = vadd.xlane.f32.xlu1 %v2264_v46  ;;  %v2261_v53 = vsel %vm745_vm1, %v4644_v29, 0.0 }
 0x712   : > { %2262 = vadd.xlane.f32.xlu0 %v2261_v53  ;;  %v4653_v25 = vadd.f32 %v4588_v58, %v2206_v22 }
 0x713   : > { %v3232_v56 = vpop.f32.mrb[34].mxu1  ;;  %v4656_v57 = vadd.f32 %v4588_v58, %v2205_v26 }
 0x714   : > { %v2208_v31 = vadd.f32 %v3232_v56, %v4271_v13  ;;  %v2176_v36 = vpop.f32.mrb[35].mxu1  ;;  %v2270_v63 = vsel %vm745_vm1, %v4653_v25, 0.0 }
 0x715   : > { %v2207_v1 = vadd.f32 %v2176_v36, %v4274_v19  ;;  %2271 = vadd.xlane.f32.xlu1 %v2270_v63  ;;  %v2267_v27 = vsel %vm745_vm1, %v4656_v57, 0.0 }
 0x716   : > { %2268 = vadd.xlane.f32.xlu0 %v2267_v27  ;;  %v4665_v7 = vadd.f32 %v4588_v58, %v2208_v31 }
 0x717   : > { %v3235_v42 = vpop.f32.mrb[36].mxu1  ;;  %v4668_v38 = vadd.f32 %v4588_v58, %v2207_v1 }
 0x718   : > { %v2210_v13 = vadd.f32 %v3235_v42, %v4283_v43  ;;  %v2186_v49 = vpop.f32.mrb[37].mxu1  ;;  %v2276_v47 = vsel %vm745_vm1, %v4665_v7, 0.0 }
 0x719   : > { %v2209_v19 = vadd.f32 %v2186_v49, %v4286_v23  ;;  %2277 = vadd.xlane.f32.xlu1 %v2276_v47  ;;  %v2273_v32 = vsel %vm745_vm1, %v4668_v38, 0.0 }
 0x71a   : > { %2274 = vadd.xlane.f32.xlu0 %v2273_v32  ;;  %v4677_v18 = vadd.f32 %v4588_v58, %v2210_v13 }
 0x71b   : > { %v4680_v44 = vadd.f32 %v4588_v58, %v2209_v19 }
 0x71c   : > { %v2282_v43 = vsel %vm745_vm1, %v4677_v18, 0.0 }
 0x71d   : > { %2283 = vadd.xlane.f32.xlu1 %v2282_v43  ;;  %v2279_v52 = vsel %vm745_vm1, %v4680_v44, 0.0 }
 0x71e   : > { %2280 = vadd.xlane.f32.xlu0 %v2279_v52 }
 0x78e   : > { %v2242_v23 = vpop.xlane.xlu1 %2241 }
 0x78f   : > { %v2286_v21 = vmul.f32 0.015625, %v2242_v23  ;;  %v2239_v10 = vpop.xlane.xlu0 %2238 }
 0x790   : > { %v2285_v2 = vmul.f32 0.015625, %v2239_v10 }
 0x791   : > { %v4687_v55 = vsub.f32 %v4593_v20, %v2286_v21 }
 0x792   : > { %v4690_v40 = vsub.f32 %v4596_v45, %v2285_v2  ;;  %v2248_v58 = vpop.xlane.xlu1 %2247 }
 0x793   : > { %v2288_v37 = vmul.f32 0.015625, %v2248_v58  ;;  %v2245_v11 = vpop.xlane.xlu0 %2244  ;;  %v2318_v54 = vmul.f32 %v4687_v55, %v4687_v55 }
 0x794   : > { %v2287_v34 = vmul.f32 0.015625, %v2245_v11  ;;  %v2317_v60 = vmul.f32 %v4690_v40, %v4690_v40 }
 0x795   : > { %v4697_v51 = vsub.f32 %v4605_v41, %v2288_v37  ;;  %v2336_v17 = vsel %vm745_vm1, %v2318_v54, 0.0 }
 0x796   : > { %v4701_v20 = vsub.f32 %v4608_v62, %v2287_v34  ;;  %v2254_v45 = vpop.xlane.xlu1 %2253  ;;  %2337 = vadd.xlane.f32.xlu1 %v2336_v17  ;;  %v2333_v59 = vsel %vm745_vm1, %v2317_v60, 0.0 }
 0x797   : > { %v2290_v61 = vmul.f32 0.015625, %v2254_v45  ;;  %2334 = vadd.xlane.f32.xlu0 %v2333_v59  ;;  %v2251_v39 = vpop.xlane.xlu0 %2250  ;;  %v2320_v33 = vmul.f32 %v4697_v51, %v4697_v51 }
 0x798   : > { %v2289_v3 = vmul.f32 0.015625, %v2251_v39  ;;  %v2319_v41 = vmul.f32 %v4701_v20, %v4701_v20 }
 0x799   : > { %v4709_v35 = vsub.f32 %v4617_v28, %v2290_v61  ;;  %v2342_v62 = vsel %vm745_vm1, %v2320_v33, 0.0 }
 0x79a   : > { %v4713_v6 = vsub.f32 %v4620_v48, %v2289_v3  ;;  %v2260_v12 = vpop.xlane.xlu1 %2259  ;;  %2343 = vadd.xlane.f32.xlu1 %v2342_v62  ;;  %v2339_v15 = vsel %vm745_vm1, %v2319_v41, 0.0  ;;  %v3654_v41 = vmov 0  }
 0x79b   : > { %v2292_v8 = vmul.f32 0.015625, %v2260_v12  ;;  %2340 = vadd.xlane.f32.xlu0 %v2339_v15  ;;  %v2257_v4 = vpop.xlane.xlu0 %2256  ;;  %v2322_v9 = vmul.f32 %v4709_v35, %v4709_v35  ;;  %3396 = vset.pattern.permute.xlu1 %v3654_v41 }
 0x79c   : > { %v2291_v0 = vmul.f32 0.015625, %v2257_v4  ;;  %v2321_v28 = vmul.f32 %v4713_v6, %v4713_v6  ;;  %3397 = vset.pattern.permute.xlu0 %v3654_v41 }
 0x79d   : > { %v4721_v5 = vsub.f32 %v4629_v14, %v2292_v8  ;;  %v2348_v48 = vsel %vm745_vm1, %v2322_v9, 0.0 }
 0x79e   : > { %v4725_v24 = vsub.f32 %v4632_v16, %v2291_v0  ;;  %v2266_v22 = vpop.xlane.xlu1 %2265  ;;  %2349 = vadd.xlane.f32.xlu1 %v2348_v48  ;;  %v2345_v30 = vsel %vm745_vm1, %v2321_v28, 0.0 }
 0x79f   : > { %v2294_v46 = vmul.f32 0.015625, %v2266_v22  ;;  %2346 = vadd.xlane.f32.xlu0 %v2345_v30  ;;  %v2263_v26 = vpop.xlane.xlu0 %2262  ;;  %v2324_v53 = vmul.f32 %v4721_v5, %v4721_v5 }
 0x7a0   : > { %v2293_v56 = vmul.f32 0.015625, %v2263_v26  ;;  %v2323_v14 = vmul.f32 %v4725_v24, %v4725_v24 }
 0x7a1   : > { %v4733_v31 = vsub.f32 %v4641_v50, %v2294_v46  ;;  %v2354_v16 = vsel %vm745_vm1, %v2324_v53, 0.0 }
 0x7a2   : > { %v4737_v36 = vsub.f32 %v4644_v29, %v2293_v56  ;;  %v2272_v63 = vpop.xlane.xlu1 %2271  ;;  %2355 = vadd.xlane.f32.xlu1 %v2354_v16  ;;  %v2351_v1 = vsel %vm745_vm1, %v2323_v14, 0.0 }
 0x7a3   : > { %v2296_v27 = vmul.f32 0.015625, %v2272_v63  ;;  %2352 = vadd.xlane.f32.xlu0 %v2351_v1  ;;  %v2269_v42 = vpop.xlane.xlu0 %2268  ;;  %v2326_v13 = vmul.f32 %v4733_v31, %v4733_v31 }
 0x7a4   : > { %v2295_v49 = vmul.f32 0.015625, %v2269_v42  ;;  %v2325_v50 = vmul.f32 %v4737_v36, %v4737_v36 }
 0x7a5   : > { %v4745_v47 = vsub.f32 %v4653_v25, %v2296_v27  ;;  %v2360_v29 = vsel %vm745_vm1, %v2326_v13, 0.0 }
 0x7a6   : > { %v4749_v19 = vsub.f32 %v4656_v57, %v2295_v49  ;;  %v2278_v32 = vpop.xlane.xlu1 %2277  ;;  %2361 = vadd.xlane.f32.xlu1 %v2360_v29  ;;  %v2357_v43 = vsel %vm745_vm1, %v2325_v50, 0.0  ;;  %v4785_v50 = vld [vmem:[%s5000_s9] ss:$0 sm:$0xff] }
 0x7a7   : > { %v2298_v52 = vmul.f32 0.015625, %v2278_v32  ;;  %2358 = vadd.xlane.f32.xlu0 %v2357_v43  ;;  %v2275_v23 = vpop.xlane.xlu0 %2274  ;;  %v2328_v21 = vmul.f32 %v4745_v47, %v4745_v47 }
 0x7a8   : > { %v2297_v10 = vmul.f32 0.015625, %v2275_v23  ;;  %v2327_v25 = vmul.f32 %v4749_v19, %v4749_v19 }
 0x7a9   : > { %v4757_v2 = vsub.f32 %v4665_v7, %v2298_v52  ;;  %v2366_v57 = vsel %vm745_vm1, %v2328_v21, 0.0 }
 0x7aa   : > { %v4761_v58 = vsub.f32 %v4668_v38, %v2297_v10  ;;  %2367 = vadd.xlane.f32.xlu1 %v2366_v57  ;;  %v2284_v37 = vpop.xlane.xlu1 %2283  ;;  %v2363_v11 = vsel %vm745_vm1, %v2327_v25, 0.0  ;;  %v4791_v10 = vld [vmem:[%s5001_s10] ss:$0 sm:$0xff] }
 0x7ab   : > { %v2300_v54 = vmul.f32 0.015625, %v2284_v37  ;;  %2364 = vadd.xlane.f32.xlu0 %v2363_v11  ;;  %v2281_v34 = vpop.xlane.xlu0 %2280  ;;  %v2330_v60 = vmul.f32 %v4757_v2, %v4757_v2 }
 0x7ac   : > { %v2299_v17 = vmul.f32 0.015625, %v2281_v34  ;;  %v2329_v7 = vmul.f32 %v4761_v58, %v4761_v58 }
 0x7ad   : > { %v4769_v45 = vsub.f32 %v4677_v18, %v2300_v54  ;;  %v2372_v38 = vsel %vm745_vm1, %v2330_v60, 0.0 }
 0x7ae   : > { %v4773_v59 = vsub.f32 %v4680_v44, %v2299_v17  ;;  %2373 = vadd.xlane.f32.xlu1 %v2372_v38  ;;  %v2369_v61 = vsel %vm745_vm1, %v2329_v7, 0.0 }
 0x7af   : > { %2370 = vadd.xlane.f32.xlu0 %v2369_v61  ;;  %v2332_v39 = vmul.f32 %v4769_v45, %v4769_v45 }
 0x7b0   : > { %v2331_v33 = vmul.f32 %v4773_v59, %v4773_v59 }
 0x7b1   : > { %v2378_v3 = vsel %vm745_vm1, %v2332_v39, 0.0 }
 0x7b2   : > { %2379 = vadd.xlane.f32.xlu1 %v2378_v3  ;;  %v2375_v18 = vsel %vm745_vm1, %v2331_v33, 0.0 }
 0x7b3   : > { %2376 = vadd.xlane.f32.xlu0 %v2375_v18 }
 0x823   : > { %v2338_v44 = vpop.xlane.xlu1 %2337 }
 0x824   : > { %v2382_v62 = vmul.f32 0.015625, %v2338_v44  ;;  %v2335_v12 = vpop.xlane.xlu0 %2334 }
 0x825   : > { %v2381_v15 = vmul.f32 0.015625, %v2335_v12 }
 0x826   : > { %v2398_v8 = vadd.f32 1e-05, %v2382_v62 }
 0x827   : > { %v2397_v4 = vadd.f32 1e-05, %v2381_v15  ;;  %v2344_v9 = vpop.xlane.xlu1 %2343 }
 0x828   : > { %3558 = vrsqrt.f32 %v2398_v8  ;;  %v2384_v0 = vmul.f32 0.015625, %v2344_v9  ;;  %v2341_v28 = vpop.xlane.xlu0 %2340 }
 0x829   : > { %3560 = vrsqrt.f32 %v2397_v4  ;;  %v2383_v48 = vmul.f32 0.015625, %v2341_v28 }
 0x82a   : > { %v2400_v22 = vadd.f32 1e-05, %v2384_v0 }
 0x82b   : > { %v2399_v30 = vadd.f32 1e-05, %v2383_v48  ;;  %v2350_v46 = vpop.xlane.xlu1 %2349 }
 0x82c   : > { %3562 = vrsqrt.f32 %v2400_v22  ;;  %v2386_v26 = vmul.f32 0.015625, %v2350_v46  ;;  %v2347_v53 = vpop.xlane.xlu0 %2346 }
 0x82d   : > { %3564 = vrsqrt.f32 %v2399_v30  ;;  %v2385_v56 = vmul.f32 0.015625, %v2347_v53 }
 0x82e   : > { %v2402_v14 = vadd.f32 1e-05, %v2386_v26 }
 0x82f   : > { %v2401_v16 = vadd.f32 1e-05, %v2385_v56  ;;  %v2356_v63 = vpop.xlane.xlu1 %2355 }
 0x830   : > { %3566 = vrsqrt.f32 %v2402_v14  ;;  %v2388_v1 = vmul.f32 0.015625, %v2356_v63  ;;  %v2353_v27 = vpop.xlane.xlu0 %2352 }
 0x831   : > { %3568 = vrsqrt.f32 %v2401_v16  ;;  %v2387_v42 = vmul.f32 0.015625, %v2353_v27 }
 0x832   : > { %v3559_v13 = vpop.eup %3558  ;;  %v2404_v49 = vadd.f32 1e-05, %v2388_v1 }
 0x833   : > { %v3561_v29 = vpop.eup %3560  ;;  %v2403_v32 = vadd.f32 1e-05, %v2387_v42  ;;  %v2362_v43 = vpop.xlane.xlu1 %2361  ;;  %v2430_v52 = vmul.f32 %v3559_v13, %v4687_v55  ;;  %v4798_v55 = vld [vmem:[%s5002_s11] ss:$0 sm:$0xff] }
 0x834   : > { %3570 = vrsqrt.f32 %v2404_v49  ;;  %v2390_v23 = vmul.f32 0.015625, %v2362_v43  ;;  %v2359_v21 = vpop.xlane.xlu0 %2358  ;;  %v2429_v25 = vmul.f32 %v3561_v29, %v4690_v40 }
 0x835   : > { %3572 = vrsqrt.f32 %v2403_v32  ;;  %v2389_v57 = vmul.f32 0.015625, %v2359_v21  ;;  %v2452_v37 = vmul.f32 %v4785_v50, %v2430_v52 }
 0x836   : > { %v3563_v11 = vpop.eup %3562  ;;  %v2406_v54 = vadd.f32 1e-05, %v2390_v23  ;;  %v2451_v34 = vmul.f32 %v4785_v50, %v2429_v25 }
 0x837   : > { %v3565_v60 = vpop.eup %3564  ;;  %v2405_v17 = vadd.f32 1e-05, %v2389_v57  ;;  %v4801_v7 = vpop.xlane.xlu1 %2367  ;;  %v2474_v38 = vadd.f32 %v4791_v10, %v2452_v37  ;;  %v2432_v40 = vmul.f32 %v3563_v11, %v4697_v51 }
 0x838   : > { %3574 = vrsqrt.f32 %v2406_v54  ;;  %v2365_v61 = vpop.xlane.xlu0 %2364  ;;  %v2473_v39 = vadd.f32 %v4791_v10, %v2451_v34  ;;  %v2431_v33 = vmul.f32 %v3565_v60, %v4701_v20 }
 0x839   : > { %3576 = vrsqrt.f32 %v2405_v17  ;;  %v2391_v3 = vmul.f32 0.015625, %v2365_v61  ;;  %v2497_v18 = vmul.f32 %v4798_v55, %v2474_v38  ;;  %v2454_v41 = vmul.f32 %v4785_v50, %v2432_v40 }
 0x83a   : > { %v3567_v44 = vpop.eup %3566  ;;  %v2496_v62 = vmul.f32 %v4798_v55, %v2473_v39  ;;  %v2453_v12 = vmul.f32 %v4785_v50, %v2431_v33 }
 0x83b   : > { %v3569_v15 = vpop.eup %3568  ;;  %v2407_v8 = vadd.f32 1e-05, %v2391_v3  ;;  %v2374_v51 = vpop.xlane.xlu1 %2373  ;;  %v2515_v4 = vsel %vm745_vm1, %v2497_v18, 0.0  ;;  %v2476_v9 = vadd.f32 %v4791_v10, %v2454_v41  ;;  %v2434_v20 = vmul.f32 %v3567_v44, %v4709_v35 }
 0x83c   : > { %v2394_v0 = vmul.f32 0.015625, %v2374_v51  ;;  %2516 = vadd.xlane.f32.xlu1 %v2515_v4  ;;  %v2371_v28 = vpop.xlane.xlu0 %2370  ;;  %v2512_v48 = vsel %vm745_vm1, %v2496_v62, 0.0  ;;  %v2475_v22 = vadd.f32 %v4791_v10, %v2453_v12  ;;  %v2433_v35 = vmul.f32 %v3569_v15, %v4713_v6 }
 0x83d   : > { %3578 = vrsqrt.f32 %v2407_v8  ;;  %v2393_v30 = vmul.f32 0.015625, %v2371_v28  ;;  %2513 = vadd.xlane.f32.xlu0 %v2512_v48  ;;  %v2499_v46 = vmul.f32 %v4798_v55, %v2476_v9  ;;  %v2456_v26 = vmul.f32 %v4785_v50, %v2434_v20 }
 0x83e   : > { %v3571_v53 = vpop.eup %3570  ;;  %v2410_v56 = vadd.f32 1e-05, %v2394_v0  ;;  %v2498_v14 = vmul.f32 %v4798_v55, %v2475_v22  ;;  %v2455_v29 = vmul.f32 %v4785_v50, %v2433_v35 }
 0x83f   : > { %v3573_v16 = vpop.eup %3572  ;;  %v2521_v63 = vsel %vm745_vm1, %v2499_v46, 0.0  ;;  %v2478_v1 = vadd.f32 %v4791_v10, %v2456_v26  ;;  %v2436_v27 = vmul.f32 %v3571_v53, %v4721_v5  ;;  %v2409_v42 = vadd.f32 1e-05, %v2393_v30  ;;  %v2380_v32 = vpop.xlane.xlu1 %2379 }
 0x840   : > { %2522 = vadd.xlane.f32.xlu1 %v2521_v63  ;;  %v2377_v13 = vpop.xlane.xlu0 %2376  ;;  %v2518_v49 = vsel %vm745_vm1, %v2498_v14, 0.0  ;;  %3580 = vrsqrt.f32 %v2410_v56  ;;  %v2477_v21 = vadd.f32 %v4791_v10, %v2455_v29  ;;  %v2435_v5 = vmul.f32 %v3573_v16, %v4725_v24 }
 0x841   : > { %v2395_v43 = vmul.f32 0.015625, %v2377_v13  ;;  %2519 = vadd.xlane.f32.xlu0 %v2518_v49  ;;  %v2501_v6 = vmul.f32 %v4798_v55, %v2478_v1  ;;  %v2458_v52 = vmul.f32 %v4785_v50, %v2436_v27  ;;  %v2396_v54 = vmul.f32 0.015625, %v2380_v32 }
 0x842   : > { %v3575_v23 = vpop.eup %3574  ;;  %v2500_v34 = vmul.f32 %v4798_v55, %v2477_v21  ;;  %v2457_v60 = vmul.f32 %v4785_v50, %v2435_v5  ;;  %3582 = vrsqrt.f32 %v2409_v42  ;;  %v2392_v46 = vmul.f32 0.015625, %v4801_v7 }
 0x843   : > { %v3577_v25 = vpop.eup %3576  ;;  %v2527_v57 = vsel %vm745_vm1, %v2501_v6, 0.0  ;;  %v2480_v37 = vadd.f32 %v4791_v10, %v2458_v52  ;;  %v2438_v11 = vmul.f32 %v3575_v23, %v4733_v31  ;;  %v2411_v17 = vadd.f32 1e-05, %v2395_v43 }
 0x844   : > { %2528 = vadd.xlane.f32.xlu1 %v2527_v57  ;;  %v2437_v40 = vmul.f32 %v3577_v25, %v4737_v36  ;;  %v2524_v24 = vsel %vm745_vm1, %v2500_v34, 0.0  ;;  %v2479_v61 = vadd.f32 %v4791_v10, %v2457_v60  ;;  %v2412_v31 = vadd.f32 1e-05, %v2396_v54 }
 0x845   : > { %v2503_v38 = vmul.f32 %v4798_v55, %v2480_v37  ;;  %v2460_v39 = vmul.f32 %v4785_v50, %v2438_v11  ;;  %2525 = vadd.xlane.f32.xlu0 %v2524_v24  ;;  %3584 = vrsqrt.f32 %v2411_v17  ;;  %v2408_v16 = vadd.f32 1e-05, %v2392_v46 }
 0x846   : > { %v2459_v18 = vmul.f32 %v4785_v50, %v2437_v40  ;;  %v2502_v41 = vmul.f32 %v4798_v55, %v2479_v61  ;;  %3586 = vrsqrt.f32 %v2412_v31  ;;  %v2566_v40 = vlaneseq }
 0x847   : > { %v3579_v33 = vpop.eup %3578  ;;  %v2533_v3 = vsel %vm745_vm1, %v2503_v38, 0.0  ;;  %v2482_v44 = vadd.f32 %v4791_v10, %v2460_v39  ;;  %3588 = vrsqrt.f32 %v2408_v16 }
 0x848   : > { %v2439_v36 = vmul.f32 %v3579_v33, %v4749_v19  ;;  %v2481_v12 = vadd.f32 %v4791_v10, %v2459_v18  ;;  %v2530_v15 = vsel %vm745_vm1, %v2502_v41, 0.0  ;;  %v2560_v19 = vld [vmem:[#allocation2] sm:$0x1]  ;;  %v4880_v61 = vshrl.u32 %v2566_v40, 7 }
 0x849   : > { %2534 = vadd.xlane.f32.xlu0 %v2533_v3  ;;  %v2505_v8 = vmul.f32 %v4798_v55, %v2482_v44 }
 0x84a   : > { %v3581_v62 = vpop.eup %3580  ;;  %v2461_v51 = vmul.f32 %v4785_v50, %v2439_v36  ;;  %v2504_v20 = vmul.f32 %v4798_v55, %v2481_v12 }
 0x84b   : > { %v2442_v4 = vmul.f32 %v3581_v62, %v4757_v2  ;;  %v2539_v0 = vsel %vm745_vm1, %v2505_v8, 0.0 }
 0x84c   : > { %v3583_v9 = vpop.eup %3582  ;;  %v2483_v28 = vadd.f32 %v4791_v10, %v2461_v51  ;;  %v2536_v2 = vsel %vm745_vm1, %v2504_v20, 0.0 }
 0x84d   : > { %2531 = vadd.xlane.f32.xlu0 %v2530_v15  ;;  %v2464_v48 = vmul.f32 %v4785_v50, %v2442_v4  ;;  %v2441_v22 = vmul.f32 %v3583_v9, %v4761_v58 }
 0x84e   : > { %v2506_v53 = vmul.f32 %v4798_v55, %v2483_v28 }
 0x84f   : > { %v3585_v30 = vpop.eup %3584  ;;  %v2486_v56 = vadd.f32 %v4791_v10, %v2464_v48  ;;  %v2463_v14 = vmul.f32 %v4785_v50, %v2441_v22 }
 0x850   : > { %v3587_v26 = vpop.eup %3586  ;;  %v2443_v35 = vmul.f32 %v3585_v30, %v4773_v59  ;;  %v2542_v63 = vsel %vm745_vm1, %v2506_v53, 0.0 }
 0x851   : > { %2540 = vadd.xlane.f32.xlu0 %v2539_v0  ;;  %v2444_v58 = vmul.f32 %v3587_v26, %v4769_v45  ;;  %v2509_v7 = vmul.f32 %v4798_v55, %v2486_v56  ;;  %v2485_v1 = vadd.f32 %v4791_v10, %v2463_v14  ;;  %v3589_v43 = vpop.eup %3588 }
 0x852   : > { %v2465_v27 = vmul.f32 %v4785_v50, %v2443_v35  ;;  %v2440_v23 = vmul.f32 %v3589_v43, %v4745_v47 }
 0x853   : > { %v2551_v42 = vsel %vm745_vm1, %v2509_v7, 0.0  ;;  %v2508_v13 = vmul.f32 %v4798_v55, %v2485_v1  ;;  %v2466_v49 = vmul.f32 %v4785_v50, %v2444_v58 }
 0x854   : > { %v2487_v59 = vadd.f32 %v4791_v10, %v2465_v27  ;;  %v2462_v5 = vmul.f32 %v4785_v50, %v2440_v23  ;;  %v2568_v50 = vsub.s32 0, %v4880_v61 }
 0x855   : > { %2563 = vperm.xlu1 %3396, %v2560_v19   ;;  %2537 = vadd.xlane.f32.xlu0 %v2536_v2  ;;  %v2548_v45 = vsel %vm745_vm1, %v2508_v13, 0.0  ;;  %v2488_v32 = vadd.f32 %v4791_v10, %v2466_v49 }
 0x856   : > { %v2510_v29 = vmul.f32 %v4798_v55, %v2487_v59  ;;  %v2484_v25 = vadd.f32 %v4791_v10, %v2462_v5  ;;  %v4885_v10 = vand.u32 127, %v2566_v40 }
 0x857   : > { %v2511_v52 = vmul.f32 %v4798_v55, %v2488_v32 }
 0x858   : > { %v2554_v6 = vsel %vm745_vm1, %v2510_v29, 0.0  ;;  %v2507_v57 = vmul.f32 %v4798_v55, %v2484_v25  ;;  %v2608_v31 = vadd.s32 4294967288, %v4885_v10  ;;  %v2615_v18 = vadd.s32 4294967280, %v4885_v10 }
 0x859   : > { %2543 = vadd.xlane.f32.xlu0 %v2542_v63  ;;  %v2557_v21 = vsel %vm745_vm1, %v2511_v52, 0.0  ;;  %v2606_v36 = vsub.s32 %v4885_v10, %v4880_v61  ;;  %v2622_v9 = vadd.s32 4294967272, %v4885_v10  ;;  %v2629_v0 = vadd.s32 4294967264, %v4885_v10 }
 0x85a   : > { %v2545_v37 = vsel %vm745_vm1, %v2507_v57, 0.0  ;;  %v2611_v62 = vsub.s32 %v2608_v31, %v4880_v61  ;;  %v2618_v15 = vsub.s32 %v2615_v18, %v4880_v61  ;;  %v2636_v30 = vadd.s32 4294967256, %v4885_v10 }
 0x85b   : > { %v2625_v48 = vsub.s32 %v2622_v9, %v4880_v61  ;;  %v2632_v26 = vsub.s32 %v2629_v0, %v4880_v61  ;;  %v2643_v56 = vadd.s32 4294967248, %v4885_v10  ;;  %v2657_v63 = vadd.s32 4294967232, %v4885_v10 }
 0x85c   : > { %v2639_v16 = vsub.s32 %v2636_v30, %v4880_v61  ;;  %v2650_v1 = vadd.s32 4294967240, %v4885_v10  ;;  %v2664_v49 = vadd.s32 4294967224, %v4885_v10  ;;  %v2678_v57 = vadd.s32 4294967208, %v4885_v10 }
 0x85d   : > { %2552 = vadd.xlane.f32.xlu0 %v2551_v42  ;;  %v2646_v42 = vsub.s32 %v2643_v56, %v4880_v61  ;;  %v2660_v29 = vsub.s32 %v2657_v63, %v4880_v61  ;;  %v2699_v40 = vadd.s32 4294967184, %v4885_v10 }
 0x85e   : > { %v2653_v43 = vsub.s32 %v2650_v1, %v4880_v61  ;;  %v2667_v5 = vsub.s32 %v2664_v49, %v4880_v61 }
 0x861   : > { %2549 = vadd.xlane.f32.xlu0 %v2548_v45  ;;  %v2671_v45 = vadd.s32 4294967216, %v4885_v10 }
 0x863   : > { %v2674_v25 = vsub.s32 %v2671_v45, %v4880_v61 }
 0x865   : > { %2555 = vadd.xlane.f32.xlu0 %v2554_v6 }
 0x869   : > { %2558 = vadd.xlane.f32.xlu0 %v2557_v21 }
 0x879   : > { %2546 = vadd.xlane.f32.xlu1 %v2545_v37 }
 0x8c9   : > { %v2517_v34 = vpop.xlane.xlu1 %2516 }
 0x8ca   : > { %v2514_v11 = vpop.xlane.xlu0 %2513 }
 0x8cd   : > { %v2523_v17 = vpop.xlane.xlu1 %2522 }
 0x8ce   : > { %v2520_v54 = vpop.xlane.xlu0 %2519 }
 0x8d1   : > { %v2529_v24 = vpop.xlane.xlu1 %2528 }
 0x8d2   : > { %v2526_v60 = vpop.xlane.xlu0 %2525 }
 0x8d5   : > { %v2564_v55 = vpop.permute.xlu1 %2563 }
 0x8d6   : > { %v2535_v38 = vpop.xlane.xlu0 %2534  ;;  %v4887_v33 = vrot.slane %v2564_v55, %v2568_v50  ;;  %v2681_v50 = vsub.s32 %v2678_v57, %v4880_v61 }
 0x8d8   : > { %v2570_v41 = vadd.f32 %v4887_v33, %v2514_v11  ;;  %v2571_v44 = vadd.f32 %v4887_v33, %v2517_v34  ;;  %v2572_v12 = vadd.f32 %v4887_v33, %v2520_v54  ;;  %v2573_v19 = vadd.f32 %v4887_v33, %v2523_v17 }
 0x8d9   : > { %v2574_v46 = vadd.f32 %v4887_v33, %v2526_v60  ;;  %v2575_v14 = vadd.f32 %v4887_v33, %v2529_v24  ;;  %v2577_v6 = vadd.f32 %v4887_v33, %v2535_v38  ;;  %v2685_v34 = vadd.s32 4294967200, %v4885_v10 }
 0x8da   : > { %v2532_v47 = vpop.xlane.xlu0 %2531  ;;  %v2607_v51 = vrot.slane %v2570_v41, %v2606_v36  ;;  %v2612_v4 = vrot.slane %v2571_v44, %v2611_v62  ;;  %v2619_v20 = vrot.slane %v2572_v12, %v2618_v15  ;;  %v2626_v53 = vrot.slane %v2573_v19, %v2625_v48 }
 0x8db   : > { %v2633_v58 = vrot.slane %v2574_v46, %v2632_v26  ;;  %v2576_v13 = vadd.f32 %v4887_v33, %v2532_v47  ;;  %v2640_v59 = vrot.slane %v2575_v14, %v2639_v16  ;;  %v2654_v60 = vrot.slane %v2577_v6, %v2653_v43 }
 0x8dc   : > { %v2614_v28 = vsel %vm2613_vm2, %v2612_v4, %v2607_v51  ;;  %v2692_v38 = vadd.s32 4294967192, %v4885_v10  ;;  %v2706_v47 = vadd.s32 4294967176, %v4885_v10  ;;  %v2702_v12 = vsub.s32 %v2699_v40, %v4880_v61 }
 0x8dd   : > { %v2621_v2 = vsel %vm2620_vm3, %v2619_v20, %v2614_v28  ;;  %v2647_v23 = vrot.slane %v2576_v13, %v2646_v42 }
 0x8de   : > { %v4882_v39 = vpop.xlane.xlu0 %2540  ;;  %v2628_v35 = vsel %vm2627_vm4, %v2626_v53, %v2621_v2  ;;  %v2695_v36 = vsub.s32 %v2692_v38, %v4880_v61 }
 0x8df   : > { %v2635_v27 = vsel %vm2634_vm5, %v2633_v58, %v2628_v35  ;;  %v2579_v17 = vadd.f32 %v4887_v33, %v4882_v39 }
 0x8e0   : > { %v2642_v52 = vsel %vm2641_vm6, %v2640_v59, %v2635_v27 }
 0x8e1   : > { %v2649_v37 = vsel %vm2648_vm7, %v2647_v23, %v2642_v52  ;;  %v2668_v44 = vrot.slane %v2579_v17, %v2667_v5 }
 0x8e2   : > { %v2538_v3 = vpop.xlane.xlu0 %2537  ;;  %v2656_v24 = vsel %vm2655_vm8, %v2654_v60, %v2649_v37 }
 0x8e3   : > { %v2578_v32 = vadd.f32 %v4887_v33, %v2538_v3  ;;  %v2688_v3 = vsub.s32 %v2685_v34, %v4880_v61 }
 0x8e5   : > { %v2661_v11 = vrot.slane %v2578_v32, %v2660_v29 }
 0x8e6   : > { %v2544_v8 = vpop.xlane.xlu0 %2543 }
 0x8e7   : > { %v2580_v54 = vadd.f32 %v4887_v33, %v2544_v8  ;;  %v2663_v55 = vsel %vm2662_vm9, %v2661_v11, %v2656_v24  ;;  %v2709_v8 = vsub.s32 %v2706_v47, %v4880_v61 }
 0x8e8   : > { %v2670_v51 = vsel %vm2669_vm10, %v2668_v44, %v2663_v55 }
 0x8e9   : > { %v2675_v31 = vrot.slane %v2580_v54, %v2674_v25 }
 0x8ea   : > { %v2553_v22 = vpop.xlane.xlu0 %2552 }
 0x8eb   : > { %v2583_v62 = vadd.f32 %v4887_v33, %v2553_v22  ;;  %v2677_v20 = vsel %vm2676_vm11, %v2675_v31, %v2670_v51 }
 0x8ed   : > { %v2696_v19 = vrot.slane %v2583_v62, %v2695_v36 }
 0x8ee   : > { %v2550_v7 = vpop.xlane.xlu0 %2549 }
 0x8ef   : > { %v2582_v18 = vadd.f32 %v4887_v33, %v2550_v7 }
 0x8f1   : > { %v2689_v0 = vrot.slane %v2582_v18, %v2688_v3 }
 0x8f2   : > { %v2556_v21 = vpop.xlane.xlu0 %2555 }
 0x8f3   : > { %v2584_v15 = vadd.f32 %v4887_v33, %v2556_v21 }
 0x8f5   : > { %v2703_v61 = vrot.slane %v2584_v15, %v2702_v12 }
 0x8f6   : > { %v2559_v39 = vpop.xlane.xlu0 %2558 }
 0x8f7   : > { %v2585_v4 = vadd.f32 %v4887_v33, %v2559_v39 }
 0x8f9   : > { %v2710_v22 = vrot.slane %v2585_v4, %v2709_v8 }
 0x906   : > { %v2547_v41 = vpop.xlane.xlu1 %2546 }
 0x907   : > { %v2581_v10 = vadd.f32 %v4887_v33, %v2547_v41 }
 0x909   : > { %v2682_v9 = vrot.slane %v2581_v10, %v2681_v50 }
 0x90b   : > { %v2684_v28 = vsel %vm2683_vm12, %v2682_v9, %v2677_v20 }
 0x90c   : > { %v2691_v48 = vsel %vm2690_vm13, %v2689_v0, %v2684_v28 }
 0x90d   : > { %v2698_v33 = vsel %vm2697_vm14, %v2696_v19, %v2691_v48 }
 0x90e   : > { %v2705_v30 = vsel %vm2704_vm15, %v2703_v61, %v2698_v33 }
 0x90f   : > { %v2712_v46 = vsel %vm2711_vm0, %v2710_v22, %v2705_v30 }
 0x910   : > { %2714 = vst [vmem:[%s435_s16] sm:$0x1] %v2712_v46 }
 0x911   : > { %3603 = shalt.err (!%p3600_p3)
}
 0x912   : > { %s3604_s14 = scalar_lea.hbm %s4947_s23, 16  ;;  %s3608_s22 = scalar_lea.hbm %s5004_s13, 32 }
 0x913   : > { %p3605_p4 = scmp.ne.s32.totalorder %s4947_s23, %s3604_s14  ;;  %p3609_p9 = scmp.lt.u32.totalorder %s4947_s23, %s5004_s13 }
 0x914   : > { %p3610_p10 = scmp.lt.u32.totalorder %s3608_s22, %s3604_s14  ;;  %p3612_p12 = scmp.lt.u32.totalorder %s3604_s14, %s4947_s23 }
 0x915   : > { %p3606_p7 = pnand %p3605_p4, %p3764_p5 }
 0x916   : > { %p3611_p11 = por %p3610_p10, %p3609_p9 }
 0x917   : > { %p3607_p8 = pneg %p3606_p7 }
 0x918   : > { %p3613_p13 = por %p3612_p12, %p3611_p11 }
 0x91a   : > { %p3614_p0 = pnand %p3613_p13, %p3607_p8 }
 0x91c   : > { %3617 = shalt.err (!%p3614_p0)
}
 0x91d   : > { %3356 = dma.vmem_to_hbm [thread:$0]  (%p3764_p5), %s4949_s17, 16, %s4947_s23, %s2716_s24  }
 0x91e PF: > { %p3362_p1 = scmp.ge.s32.totalorder %s3652_s30, 2  ;;  %s2740_s12 = sand.u32 1, %s3640_s27  }
 0x91f   : > { %s2741_s21 = scalar_lea.sflag [#allocation4], %s2740_s12 }
 0x920   : > { %p3359_p2 = pnand %p3362_p1, %p3768_p6 }
 0x922   : > { %3635 = dma.done.wait (!%p3359_p2), %s2741_s21, 16  }
 0x923   : > { %3637 = vsyncadd (!%p3359_p2), %s2741_s21, 4294967280  ;;  %p25_p3 = scmp.ge.s32.totalorder %s3752_s15, 4   ;;  %s5009_s27 = smov %s3644_s28 }
 0x924   : > { %s5010_s28 = smov %s3648_s29  ;;  %s5011_s29 = smov %s3762_s18 }
 0x925   : > { %s5012_s30 = smov %s3752_s15  ;;  %27 = sbr.rel (!%p25_p3) target bundleno = 6 (0x6), region = 113 }
 0x92c   :  { %2745 = vsyncpa [#allocation4], 1 }
 0x92d   :  { %2747 = vsyncpa [#allocation4 + $0x1], 1 }

</bundles_post_ra>
